<compile_context>
chip_gen: v7x
topology: tpu7x:2x2x1
jax: 0.10.0
libtpu: 0.0.40
codegen_flags: <defaults>
</compile_context>

<pallas_src>
import functools

import numpy as np
import jax
import jax.numpy as jnp
from jax import lax
from jax.experimental import pallas as pl
from jax.experimental.pallas import tpu as pltpu

LANE = 128
SUBLANE = 8


def _round_up(x, m):
    return (x + m - 1) // m * m


# ----------------------------------------------------------------------------
# Pallas kernels
# ----------------------------------------------------------------------------

def _make_tower_kernel(H, rows_h, halo, n_blocks):
    """Fused residual tower + fused value|policy 1x1 head conv.

    Block layout: rows = (image, h), lanes = w*C + c (padded to 128).
    Each 3x3 conv = 3 accumulated MXU dots (one per vertical tap dh); the
    horizontal (dw) taps are folded into a tri-diagonal-block weight, so the
    only in-kernel tap handling is a row-shifted slice from a halo'd VMEM
    scratch plus a vertical-boundary row mask (center tap unmasked).
    """

    def kernel(x_ref, w1s_ref, b1s_ref, w2s_ref, b2s_ref, wh_ref, bh_ref,
               out_ref, pad_scr):
        WCp = x_ref.shape[1]

        # Within-image vertical-boundary masks, built once from an iota
        # (no mask DMA).  Valid rows for the dh=0 / dh=2 taps.
        h_img = lax.broadcasted_iota(jnp.int32, (rows_h, 1), 0) % H
        mask_up = (h_img >= 1).astype(jnp.float32)        # tap reads row h-1
        mask_dn = (h_img <= H - 2).astype(jnp.float32)    # tap reads row h+1

        # Zero only the halo rows; the interior is overwritten by every conv.
        pad_scr[0:halo, :] = jnp.zeros((halo, WCp), jnp.float32)
        pad_scr[halo + rows_h:halo + rows_h + halo, :] = jnp.zeros(
            (halo, WCp), jnp.float32)

        def conv3x3(act, w3_ref, blk, shift_ref):
            pad_scr[halo:halo + rows_h, :] = act
            acc = None
            for dh in range(3):
                t = pad_scr[halo + dh - 1:halo + dh - 1 + rows_h, :]
                if dh == 0:
                    t = t * mask_up
                elif dh == 2:
                    t = t * mask_dn
                d = jnp.dot(t.astype(jnp.bfloat16), w3_ref[3 * blk + dh],
                            preferred_element_type=jnp.float32)
                acc = d if acc is None else acc + d
            return acc + shift_ref[blk]                    # folded BN shift

        cur = x_ref[...]
        # TODO(synk): for deep towers (many blocks / wide channels) stream the
        # per-block weights over an 'arbitrary' grid axis (carry `cur` in a
        # persistent scratch) instead of keeping every block resident in VMEM.
        for i in range(n_blocks):
            h1 = jnp.maximum(conv3x3(cur, w1s_ref, i, b1s_ref), 0.0)
            y = conv3x3(h1, w2s_ref, i, b2s_ref)
            cur = jnp.maximum(y + cur, 0.0)                # residual + ReLU

        # fused value|policy 1x1 conv (+ folded BN) + ReLU, lane-dense bf16 out
        head = jnp.dot(cur.astype(jnp.bfloat16), wh_ref[...],
                       preferred_element_type=jnp.float32) + bh_ref[...]
        out_ref[...] = jnp.maximum(head, 0.0).astype(out_ref.dtype)

    return kernel


def _make_heads_kernel(hid_v, hid_p, eps=1e-5):
    """Both MLP heads (Linear -> LayerNorm -> ReLU -> Linear) in one call.

    The first matmuls of the two heads are fused into a single 128-column
    weight (value cols [0:hid_v), policy cols [hid_v:hid_v+hid_p)); LayerNorm
    is applied per segment with the TRUE hidden sizes as divisors.
    """

    def kernel(f_ref, w1_ref, b1_ref, g_ref, be_ref,
               w2v_ref, b2v_ref, w2p_ref, b2p_ref, v_out_ref, p_out_ref):
        # bf16 operands, f32 accumulation
        h = jnp.dot(f_ref[...], w1_ref[...],
                    preferred_element_type=jnp.float32) + b1_ref[...]

        lanes = lax.broadcasted_iota(jnp.int32, (1, h.shape[-1]), 1)
        vmask = (lanes < hid_v).astype(jnp.float32)
        pmask = ((lanes >= hid_v) & (lanes < hid_v + hid_p)).astype(jnp.float32)

        # segment-wise LayerNorm (masked mean/var, true hidden size divisors)
        mu_v = jnp.sum(h * vmask, axis=-1, keepdims=True) * (1.0 / hid_v)
        mu_p = jnp.sum(h * pmask, axis=-1, keepdims=True) * (1.0 / hid_p)
        cen = h - (mu_v * vmask + mu_p * pmask)
        var_v = jnp.sum((cen * vmask) ** 2, axis=-1, keepdims=True) * (1.0 / hid_v)
        var_p = jnp.sum((cen * pmask) ** 2, axis=-1, keepdims=True) * (1.0 / hid_p)
        rstd = lax.rsqrt(var_v + eps) * vmask + lax.rsqrt(var_p + eps) * pmask
        hn = jnp.maximum(cen * rstd * g_ref[...] + be_ref[...], 0.0)
        hb = hn.astype(jnp.bfloat16)

        v_out_ref[...] = (jnp.dot(hb, w2v_ref[...],
                                  preferred_element_type=jnp.float32) + b2v_ref[...])
        p_out_ref[...] = (jnp.dot(hb, w2p_ref[...],
                                  preferred_element_type=jnp.float32) + b2p_ref[...])

    return kernel


# ----------------------------------------------------------------------------
# Tiling heuristics
# ----------------------------------------------------------------------------

def _pick_images_per_block(B, H, target_rows=512):
    """Pack as many images per grid step as fit the target matmul M; keep >=2
    grid steps only when each step still has >=256 rows (v7x megacore).  No
    artificial >=2-step cap for single-TC chips (v5e/v6e)."""
    cands = [d for d in range(1, B + 1)
             if B % d == 0 and (d * H) % SUBLANE == 0
             and d * H <= max(H, target_rows)]
    if not cands:
        cands = [d for d in range(1, B + 1)
                 if B % d == 0 and (d * H) % SUBLANE == 0]
    assert cands, "need images_per_block * H to be a multiple of 8"
    best = max(cands)
    multi = [d for d in cands if d < B and d * H >= 256]
    return max(multi) if multi else best


def _pick_batch_tile(Bpad, cap=128):
    bt = SUBLANE
    t = SUBLANE
    while t <= min(Bpad, cap):
        if Bpad % t == 0:
            bt = t
        t += SUBLANE
    # v7x: prefer >=2 grid steps once the batch is large enough
    if Bpad // bt < 2 and Bpad >= 2 * SUBLANE and (Bpad // 2) % SUBLANE == 0:
        bt = Bpad // 2
    return bt


# ----------------------------------------------------------------------------
# Wrapper
# ----------------------------------------------------------------------------

def prediction_network_forward(x_nchw, kp, *, action_space_size,
                               output_support_size, value_hidden, policy_hidden):
    """Pallas implementation of PredictionNetwork.forward.

    x_nchw: (B, C, H, W) float32  ->  (policy_logits (B, A), value (B, S))
    """
    B, C, H, W = x_nchw.shape
    WCp = kp["w1s"].shape[-1]          # packed lane width (128)
    HCp = kp["wh"].shape[-1]           # packed head-conv lane width (128)
    n_blocks = kp["b1s"].shape[0]
    assert W * C <= WCp, "packed layout needs W * num_channels <= 128"
    # TODO(synk): configurations with W*C > 128 need the channel-in-lane
    # fallback layout; not implemented here.

    ipb = _pick_images_per_block(B, H)
    rows_h = ipb * H
    halo = SUBLANE

    # NCHW -> rows=(image, h), lanes=(w, c); pad lanes to 128 (zeros).
    x2d = jnp.transpose(x_nchw, (0, 2, 3, 1)).reshape(B * H, W * C)
    if WCp > W * C:
        x2d = jnp.pad(x2d, ((0, 0), (0, WCp - W * C)))

    tower = pl.pallas_call(
        _make_tower_kernel(H, rows_h, halo, n_blocks),
        grid=(B // ipb,),
        in_specs=[
            pl.BlockSpec((rows_h, WCp), lambda b: (b, 0)),
            pl.BlockSpec(kp["w1s"].shape, lambda b: (0, 0, 0)),
            pl.BlockSpec(kp["b1s"].shape, lambda b: (0, 0, 0)),
            pl.BlockSpec(kp["w2s"].shape, lambda b: (0, 0, 0)),
            pl.BlockSpec(kp["b2s"].shape, lambda b: (0, 0, 0)),
            pl.BlockSpec(kp["wh"].shape, lambda b: (0, 0)),
            pl.BlockSpec(kp["bh"].shape, lambda b: (0, 0)),
        ],
        out_specs=pl.BlockSpec((rows_h, HCp), lambda b: (b, 0)),
        out_shape=jax.ShapeDtypeStruct((B * H, HCp), jnp.bfloat16),
        scratch_shapes=[pltpu.VMEM((rows_h + 2 * halo, WCp), jnp.float32)],
        compiler_params=pltpu.CompilerParams(dimension_semantics=("parallel",)),
    )(x2d, kp["w1s"], kp["b1s"], kp["w2s"], kp["b2s"], kp["wh"], kp["bh"])

    # (B*H, HCp) -> (B, H*HCp): the fused heads w1 was scattered at init time
    # to consume this packed order directly (no NCHW transpose on the hot path).
    feat = tower.reshape(B, H * HCp)
    Bpad = _round_up(B, SUBLANE)
    if Bpad != B:
        feat = jnp.pad(feat, ((0, Bpad - B), (0, 0)))
    bt = _pick_batch_tile(Bpad)

    hd = kp["heads"]
    Sp = hd["w2v"].shape[1]
    Ap = hd["w2p"].shape[1]

    value_p, policy_p = pl.pallas_call(
        _make_heads_kernel(value_hidden, policy_hidden),
        grid=(Bpad // bt,),
        in_specs=[pl.BlockSpec((bt, H * HCp), lambda i: (i, 0))] + [
            pl.BlockSpec(a.shape, lambda i: (0, 0)) for a in
            (hd["w1"], hd["b1"], hd["g"], hd["be"],
             hd["w2v"], hd["b2v"], hd["w2p"], hd["b2p"])
        ],
        out_specs=[pl.BlockSpec((bt, Sp), lambda i: (i, 0)),
                   pl.BlockSpec((bt, Ap), lambda i: (i, 0))],
        out_shape=(jax.ShapeDtypeStruct((Bpad, Sp), jnp.float32),
                   jax.ShapeDtypeStruct((Bpad, Ap), jnp.float32)),
        compiler_params=pltpu.CompilerParams(dimension_semantics=("parallel",)),
    )(feat, hd["w1"], hd["b1"], hd["g"], hd["be"],
      hd["w2v"], hd["b2v"], hd["w2p"], hd["b2p"])

    value = value_p[:B, :output_support_size]
    policy = policy_p[:B, :action_space_size]
    return policy, value


# ----------------------------------------------------------------------------
# Parameter folding / packing (offline, outside the kernels)
# ----------------------------------------------------------------------------

def prepare_kernel_params(p, H, W):
    """Fold BN into conv weights, build tri-diagonal-block packed conv weights,
    block-diagonal packed head-conv weight, fused/permuted MLP weights; matmul
    operands are stored in bf16, affine terms in f32."""
    C = p["value_conv"]["w"].shape[0]
    Cv = p["value_conv"]["w"].shape[1]
    Cq = p["policy_conv"]["w"].shape[1]
    Ch = Cv + Cq
    R = H * W
    WC = W * C
    assert WC <= LANE, "packed layout needs W*num_channels <= 128"
    assert W * Ch <= LANE, "packed layout needs W*(Cv+Cq) <= 128"
    WCp = LANE
    HCp = LANE

    def tridiag_conv(w9, scale):
        # w9: (9, Cin, Cout), k = dh*3+dw; fold BN scale into Cout; place the
        # three dw taps for a given dh as a tri-diagonal block matrix so the
        # conv is one dot per dh (horizontal boundary handled by absent blocks).
        wf = np.asarray(w9, np.float32) * np.asarray(scale, np.float32).reshape(1, 1, C)
        w3 = np.zeros((3, WCp, WCp), np.float32)
        for dh in range(3):
            for dw in range(3):
                blk = wf[dh * 3 + dw]
                for w in range(W):
                    v = w + dw - 1
                    if 0 <= v < W:
                        w3[dh, v * C:(v + 1) * C, w * C:(w + 1) * C] = blk
        return w3

    def packed_shift(shift):
        sh = np.zeros((1, WCp), np.float32)
        sh[0, :WC] = np.tile(np.asarray(shift, np.float32).reshape(-1), W)
        return sh

    w1s, b1s, w2s, b2s = [], [], [], []
    for blk in p["resblocks"]:
        w1s.append(tridiag_conv(blk["w1"], blk["scale1"]))
        b1s.append(packed_shift(blk["shift1"]))
        w2s.append(tridiag_conv(blk["w2"], blk["scale2"]))
        b2s.append(packed_shift(blk["shift2"]))

    kp = {
        "w1s": jnp.asarray(np.concatenate(w1s, axis=0), jnp.bfloat16),
        "b1s": jnp.asarray(np.stack(b1s), jnp.float32),
        "w2s": jnp.asarray(np.concatenate(w2s, axis=0), jnp.bfloat16),
        "b2s": jnp.asarray(np.stack(b2s), jnp.float32),
    }

    # fused value|policy 1x1 head conv (+ folded BN), block-diagonal packed.
    def fold_head(q):
        w = np.asarray(q["w"], np.float32) * np.asarray(q["scale"], np.float32).reshape(1, -1)
        b = (np.asarray(q["b"], np.float32) * np.asarray(q["scale"], np.float32)
             + np.asarray(q["shift"], np.float32))
        return w, b

    wv, bv = fold_head(p["value_conv"])
    wq, bq = fold_head(p["policy_conv"])
    w_all = np.concatenate([wv, wq], axis=1)          # (C, Ch)
    b_all = np.concatenate([bv, bq], axis=1)          # (1, Ch)
    wh = np.zeros((WCp, HCp), np.float32)
    bh = np.zeros((1, HCp), np.float32)
    for w in range(W):
        wh[w * C:(w + 1) * C, w * Ch:(w + 1) * Ch] = w_all
        bh[0, w * Ch:(w + 1) * Ch] = b_all[0]
    kp["wh"] = jnp.asarray(wh, jnp.bfloat16)
    kp["bh"] = jnp.asarray(bh, jnp.float32)

    # fused MLP heads: one first-matmul weight (value cols | policy cols),
    # rows permuted from torch NCHW-flatten order to the packed feature order.
    hv = p["value_mlp"]["w1"].shape[1]
    hp_ = p["policy_mlp"]["w1"].shape[1]
    assert hv + hp_ <= LANE, "fused head hidden widths must fit one 128-lane tile"
    feat_dim = H * HCp

    def scatter_w1(w1, head_off, cn, col_off, hid):
        out = np.zeros((feat_dim, LANE), np.float32)
        w1 = np.asarray(w1, np.float32)
        ci, hi, wi = np.meshgrid(np.arange(cn), np.arange(H), np.arange(W),
                                 indexing="ij")
        torch_idx = (ci * R + hi * W + wi).ravel()
        feat_idx = (hi * HCp + wi * Ch + head_off + ci).ravel()
        out[feat_idx, col_off:col_off + hid] = w1[torch_idx]
        return out

    w1f = (scatter_w1(p["value_mlp"]["w1"], 0, Cv, 0, hv)
           + scatter_w1(p["policy_mlp"]["w1"], Cv, Cq, hv, hp_))

    def fused_row(av, ap):
        r = np.zeros((1, LANE), np.float32)
        r[0, :hv] = np.asarray(av, np.float32).reshape(-1)
        r[0, hv:hv + hp_] = np.asarray(ap, np.float32).reshape(-1)
        return r

    b1f = fused_row(p["value_mlp"]["b1"], p["policy_mlp"]["b1"])
    gf = fused_row(p["value_mlp"]["g"], p["policy_mlp"]["g"])
    bef = fused_row(p["value_mlp"]["be"], p["policy_mlp"]["be"])

    S = p["value_mlp"]["w2"].shape[1]
    A = p["policy_mlp"]["w2"].shape[1]
    Sp = _round_up(S, LANE)
    Ap = _round_up(A, LANE)
    w2v = np.zeros((LANE, Sp), np.float32)
    w2v[:hv, :S] = np.asarray(p["value_mlp"]["w2"], np.float32)
    b2v = np.zeros((1, Sp), np.float32)
    b2v[0, :S] = np.asarray(p["value_mlp"]["b2"], np.float32).reshape(-1)
    w2p = np.zeros((LANE, Ap), np.float32)
    w2p[hv:hv + hp_, :A] = np.asarray(p["policy_mlp"]["w2"], np.float32)
    b2p = np.zeros((1, Ap), np.float32)
    b2p[0, :A] = np.asarray(p["policy_mlp"]["b2"], np.float32).reshape(-1)

    kp["heads"] = {
        "w1": jnp.asarray(w1f, jnp.bfloat16), "b1": jnp.asarray(b1f, jnp.float32),
        "g": jnp.asarray(gf, jnp.float32), "be": jnp.asarray(bef, jnp.float32),
        "w2v": jnp.asarray(w2v, jnp.bfloat16), "b2v": jnp.asarray(b2v, jnp.float32),
        "w2p": jnp.asarray(w2p, jnp.bfloat16), "b2p": jnp.asarray(b2p, jnp.float32),
    }
    return kp


# ----------------------------------------------------------------------------
# Deterministic synthetic "logical" parameters (torch layout) + BN folding
# ----------------------------------------------------------------------------

def _fold_bn(gamma, beta, mean, var, eps=1e-5):
    scale = gamma / jnp.sqrt(var + eps)
    shift = beta - mean * scale
    return scale.reshape(1, -1), shift.reshape(1, -1)


def init_params(key, cfg):
    C = cfg["num_channels"]
    Cv, Cq = cfg["value_head_channels"], cfg["policy_head_channels"]
    H = W = cfg["spatial"]
    keys = iter(jax.random.split(key, 256))

    def rnd(shape, s=0.1):
        return s * jax.random.normal(next(keys), shape, jnp.float32)

    def bn(c):
        gamma = 1.0 + rnd((c,), 0.05)
        beta = rnd((c,), 0.05)
        mean = rnd((c,), 0.05)
        var = 1.0 + jnp.abs(rnd((c,), 0.05))
        return _fold_bn(gamma, beta, mean, var)

    params = {"resblocks": []}
    for _ in range(cfg["num_res_blocks"]):
        blk = {}
        for tag in ("1", "2"):
            blk["w" + tag] = rnd((9, C, C), 0.05)        # 3x3 conv, bias=False
            blk["scale" + tag], blk["shift" + tag] = bn(C)
        params["resblocks"].append(blk)

    def head_conv(cout):
        scale, shift = bn(cout)
        return {"w": rnd((C, cout), 0.1), "b": rnd((1, cout), 0.1),
                "scale": scale, "shift": shift}

    params["value_conv"] = head_conv(Cv)
    params["policy_conv"] = head_conv(Cq)

    def mlp(fin, hid, fout):
        # TODO(synk): last_linear_layer_init_zero ignored (deterministic non-zero
        # init keeps the numerical self-check meaningful); forward semantics unchanged.
        return {"w1": rnd((fin, hid), 0.05), "b1": rnd((1, hid), 0.05),
                "g": 1.0 + rnd((1, hid), 0.05), "be": rnd((1, hid), 0.05),
                "w2": rnd((hid, fout), 0.05), "b2": rnd((1, fout), 0.05)}

    params["value_mlp"] = mlp(Cv * H * W, cfg["value_hidden"], cfg["output_support_size"])
    params["policy_mlp"] = mlp(Cq * H * W, cfg["policy_hidden"], cfg["action_space_size"])
    return params


# ----------------------------------------------------------------------------
# Numerics-matched pure-JAX reference (bf16 matmul operands, f32 accumulation)
# ----------------------------------------------------------------------------

def ref_forward(x_nchw, params):
    B, C, H, W = x_nchw.shape
    x = jnp.transpose(x_nchw, (0, 2, 3, 1))              # NHWC, f32

    def conv3(inp, w9):
        xp = jnp.pad(inp, ((0, 0), (1, 1), (1, 1), (0, 0)))
        out = jnp.zeros((B, H, W, w9.shape[-1]), jnp.float32)
        for dh in range(3):
            for dw in range(3):
                tap = lax.slice(xp, (0, dh, dw, 0), (B, dh + H, dw + W, C))
                out = out + jnp.einsum(
                    "bhwc,co->bhwo", tap.astype(jnp.bfloat16),
                    w9[dh * 3 + dw].astype(jnp.bfloat16),
                    preferred_element_type=jnp.float32)
        return out

    for blk in params["resblocks"]:
        idn = x
        h = jnp.maximum(conv3(x, blk["w1"] * blk["scale1"].reshape(1, 1, -1))
                        + blk["shift1"], 0.0)
        y = conv3(h, blk["w2"] * blk["scale2"].reshape(1, 1, -1)) + blk["shift2"]
        x = jnp.maximum(y + idn, 0.0)

    def head_conv(inp, q):
        w = (q["w"] * q["scale"].reshape(1, -1)).astype(jnp.bfloat16)
        b = (q["b"] * q["scale"] + q["shift"]).reshape(1, 1, 1, -1)
        y = jnp.einsum("bhwc,co->bhwo", inp.astype(jnp.bfloat16), w,
                       preferred_element_type=jnp.float32) + b
        return jnp.maximum(y, 0.0)

    v = head_conv(x, params["value_conv"]).transpose(0, 3, 1, 2).reshape(B, -1)
    p = head_conv(x, params["policy_conv"]).transpose(0, 3, 1, 2).reshape(B, -1)

    def mlp(z, q):
        h = jnp.dot(z.astype(jnp.bfloat16), q["w1"].astype(jnp.bfloat16),
                    preferred_element_type=jnp.float32) + q["b1"]
        mu = h.mean(-1, keepdims=True)
        var = ((h - mu) ** 2).mean(-1, keepdims=True)
        h = (h - mu) * lax.rsqrt(var + 1e-5) * q["g"] + q["be"]
        h = jnp.maximum(h, 0.0)
        return jnp.dot(h.astype(jnp.bfloat16), q["w2"].astype(jnp.bfloat16),
                       preferred_element_type=jnp.float32) + q["b2"]

    return mlp(p, params["policy_mlp"]), mlp(v, params["value_mlp"])


# ----------------------------------------------------------------------------
# Main
# ----------------------------------------------------------------------------

if __name__ == "__main__":
    # TODO(synk): continuous_action_space=True (ReparameterizationHead) and
    # training-mode BatchNorm are not implemented (inference, discrete actions).
    cfg = dict(
        num_channels=16, num_res_blocks=2, spatial=8,
        value_head_channels=4, policy_head_channels=8,
        value_hidden=32, policy_hidden=32,
        output_support_size=21, action_space_size=9,
    )
    key = jax.random.PRNGKey(0)
    kx, kparam = jax.random.split(key)
    x = jax.random.normal(
        kx, (2, cfg["num_channels"], cfg["spatial"], cfg["spatial"]), jnp.float32)

    logical = init_params(kparam, cfg)
    kparams = prepare_kernel_params(logical, cfg["spatial"], cfg["spatial"])

    fwd = jax.jit(functools.partial(
        prediction_network_forward,
        action_space_size=cfg["action_space_size"],
        output_support_size=cfg["output_support_size"],
        value_hidden=cfg["value_hidden"],
        policy_hidden=cfg["policy_hidden"]))
    policy, value = fwd(x, kparams)
    policy = jax.block_until_ready(policy)
    value = jax.block_until_ready(value)

    ref_policy, ref_value = ref_forward(x, logical)

    assert policy.shape == (2, cfg["action_space_size"])
    assert value.shape == (2, cfg["output_support_size"])
    err_p = float(jnp.max(jnp.abs(policy - ref_policy)))
    err_v = float(jnp.max(jnp.abs(value - ref_value)))
    assert jnp.allclose(policy, ref_policy, rtol=1e-2, atol=1e-2), err_p
    assert jnp.allclose(value, ref_value, rtol=1e-2, atol=1e-2), err_v

    print("KERNEL_OK")
</pallas_src>

<mosaic_0001>
module attributes {stable_mosaic.version = 11 : i64} {
  func.func @kernel(%arg0: i32, %arg1: memref<16x128xf32, #tpu.memory_space<vmem>>, %arg2: memref<6x128x128xbf16, #tpu.memory_space<vmem>>, %arg3: memref<2x1x128xf32, #tpu.memory_space<vmem>>, %arg4: memref<6x128x128xbf16, #tpu.memory_space<vmem>>, %arg5: memref<2x1x128xf32, #tpu.memory_space<vmem>>, %arg6: memref<128x128xbf16, #tpu.memory_space<vmem>>, %arg7: memref<1x128xf32, #tpu.memory_space<vmem>>, %arg8: memref<16x128xbf16, #tpu.memory_space<vmem>>, %arg9: memref<32x128xf32, #tpu.memory_space<vmem>>) attributes {dimension_semantics = [#tpu.dimension_semantics<parallel>], iteration_bounds = array<i64: 1>, scalar_prefetch = 0 : i64, scratch_operands = 1 : i64, tpu.core_type = #tpu.core_type<tc>, window_params = [{transform_indices = @transform_0, window_bounds = array<i64: 16, 128>}, {pipeline_mode = #tpu.pipeline_mode<synchronous>, transform_indices = @transform_1, window_bounds = array<i64: 6, 128, 128>}, {pipeline_mode = #tpu.pipeline_mode<synchronous>, transform_indices = @transform_2, window_bounds = array<i64: 2, 1, 128>}, {pipeline_mode = #tpu.pipeline_mode<synchronous>, transform_indices = @transform_3, window_bounds = array<i64: 6, 128, 128>}, {pipeline_mode = #tpu.pipeline_mode<synchronous>, transform_indices = @transform_4, window_bounds = array<i64: 2, 1, 128>}, {pipeline_mode = #tpu.pipeline_mode<synchronous>, transform_indices = @transform_5, window_bounds = array<i64: 128, 128>}, {pipeline_mode = #tpu.pipeline_mode<synchronous>, transform_indices = @transform_6, window_bounds = array<i64: 1, 128>}, {transform_indices = @transform_7, window_bounds = array<i64: 16, 128>}]} {
    %0 = tpu.iota {dimensions = array<i32: 0>} : vector<16x1xi32>
    %c8_i32 = arith.constant 8 : i32
    %c0_i32 = arith.constant 0 : i32
    %1 = arith.cmpi eq, %c8_i32, %c0_i32 : i32
    %c1_i32 = arith.constant 1 : i32
    %2 = arith.select %1, %c1_i32, %c8_i32 : i32
    %3 = vector.broadcast %2 : i32 to vector<16x1xi32>
    %4 = arith.remsi %0, %3 : vector<16x1xi32>
    %c0_i32_0 = arith.constant 0 : i32
    %5 = vector.broadcast %c0_i32_0 : i32 to vector<16x1xi32>
    %6 = arith.cmpi ne, %4, %5 : vector<16x1xi32>
    %c0_i32_1 = arith.constant 0 : i32
    %7 = vector.broadcast %c0_i32_1 : i32 to vector<16x1xi32>
    %8 = arith.cmpi slt, %4, %7 : vector<16x1xi32>
    %c0_i32_2 = arith.constant 0 : i32
    %9 = arith.cmpi slt, %2, %c0_i32_2 : i32
    %10 = vector.broadcast %9 : i1 to vector<16x1xi1>
    %11 = vector.broadcast %10 : vector<16x1xi1> to vector<16x1xi1>
    %12 = arith.xori %8, %11 : vector<16x1xi1>
    %13 = arith.andi %12, %6 : vector<16x1xi1>
    %14 = vector.broadcast %2 : i32 to vector<16x1xi32>
    %15 = arith.addi %4, %14 : vector<16x1xi32>
    %16 = arith.select %13, %15, %4 : vector<16x1xi1>, vector<16x1xi32>
    %c1_i32_3 = arith.constant 1 : i32
    %17 = vector.broadcast %c1_i32_3 : i32 to vector<16x1xi32>
    %18 = arith.cmpi sge, %16, %17 : vector<16x1xi32>
    %19 = arith.extui %18 : vector<16x1xi1> to vector<16x1xi32>
    %20 = arith.sitofp %19 : vector<16x1xi32> to vector<16x1xf32>
    %c6_i32 = arith.constant 6 : i32
    %21 = vector.broadcast %c6_i32 : i32 to vector<16x1xi32>
    %22 = arith.cmpi sle, %16, %21 : vector<16x1xi32>
    %23 = arith.extui %22 : vector<16x1xi1> to vector<16x1xi32>
    %24 = arith.sitofp %23 : vector<16x1xi32> to vector<16x1xf32>
    %cst = arith.constant 0.000000e+00 : f32
    %25 = vector.broadcast %cst : f32 to vector<8x128xf32>
    %c0 = arith.constant 0 : index
    %c0_4 = arith.constant 0 : index
    %26 = vector.load %arg9[%c0, %c0_4] : memref<32x128xf32, #tpu.memory_space<vmem>>, vector<8x128xf32>
    tpu.vector_store %arg9[%c0, %c0_4], %25 {strides = array<i32>} : memref<32x128xf32, #tpu.memory_space<vmem>>, vector<8x128xf32>,
    %cst_5 = arith.constant 0.000000e+00 : f32
    %27 = vector.broadcast %cst_5 : f32 to vector<8x128xf32>
    %c24 = arith.constant 24 : index
    %c0_6 = arith.constant 0 : index
    %28 = vector.load %arg9[%c24, %c0_6] : memref<32x128xf32, #tpu.memory_space<vmem>>, vector<8x128xf32>
    tpu.vector_store %arg9[%c24, %c0_6], %27 {strides = array<i32>} : memref<32x128xf32, #tpu.memory_space<vmem>>, vector<8x128xf32>,
    %c0_7 = arith.constant 0 : index
    %c0_8 = arith.constant 0 : index
    %29 = vector.load %arg1[%c0_7, %c0_8] : memref<16x128xf32, #tpu.memory_space<vmem>>, vector<16x128xf32>
    %c8 = arith.constant 8 : index
    %c0_9 = arith.constant 0 : index
    %30 = vector.load %arg9[%c8, %c0_9] : memref<32x128xf32, #tpu.memory_space<vmem>>, vector<16x128xf32>
    tpu.vector_store %arg9[%c8, %c0_9], %29 {strides = array<i32>} : memref<32x128xf32, #tpu.memory_space<vmem>>, vector<16x128xf32>,
    %c7 = arith.constant 7 : index
    %c0_10 = arith.constant 0 : index
    %31 = vector.load %arg9[%c7, %c0_10] : memref<32x128xf32, #tpu.memory_space<vmem>>, vector<16x128xf32>
    %32 = vector.broadcast %20 : vector<16x1xf32> to vector<16x128xf32>
    %33 = arith.mulf %31, %32 : vector<16x128xf32>
    %34 = arith.truncf %33 : vector<16x128xf32> to vector<16x128xbf16>
    %c0_11 = arith.constant 0 : index
    %c0_12 = arith.constant 0 : index
    %c0_13 = arith.constant 0 : index
    %35 = vector.load %arg2[%c0_11, %c0_12, %c0_13] : memref<6x128x128xbf16, #tpu.memory_space<vmem>>, vector<1x128x128xbf16>
    %36 = vector.shape_cast %35 : vector<1x128x128xbf16> to vector<128x128xbf16>
    %cst_14 = arith.constant dense<0.000000e+00> : vector<16x128xf32>
    %37 = tpu.matmul %34, %36, %cst_14 {dimension_numbers = #tpu.dot_dimension_numbers<[1], [0], [0], [1], [0, 0, 1, 1], [], []>} : vector<16x128xbf16>, vector<128x128xbf16>, vector<16x128xf32> -> vector<16x128xf32>
    %c8_15 = arith.constant 8 : index
    %c0_16 = arith.constant 0 : index
    %38 = vector.load %arg9[%c8_15, %c0_16] : memref<32x128xf32, #tpu.memory_space<vmem>>, vector<16x128xf32>
    %39 = arith.truncf %38 : vector<16x128xf32> to vector<16x128xbf16>
    %c1 = arith.constant 1 : index
    %c0_17 = arith.constant 0 : index
    %c0_18 = arith.constant 0 : index
    %40 = vector.load %arg2[%c1, %c0_17, %c0_18] : memref<6x128x128xbf16, #tpu.memory_space<vmem>>, vector<1x128x128xbf16>
    %41 = vector.shape_cast %40 : vector<1x128x128xbf16> to vector<128x128xbf16>
    %cst_19 = arith.constant dense<0.000000e+00> : vector<16x128xf32>
    %42 = tpu.matmul %39, %41, %cst_19 {dimension_numbers = #tpu.dot_dimension_numbers<[1], [0], [0], [1], [0, 0, 1, 1], [], []>} : vector<16x128xbf16>, vector<128x128xbf16>, vector<16x128xf32> -> vector<16x128xf32>
    %43 = arith.addf %37, %42 : vector<16x128xf32>
    %c9 = arith.constant 9 : index
    %c0_20 = arith.constant 0 : index
    %44 = vector.load %arg9[%c9, %c0_20] : memref<32x128xf32, #tpu.memory_space<vmem>>, vector<16x128xf32>
    %45 = vector.broadcast %24 : vector<16x1xf32> to vector<16x128xf32>
    %46 = arith.mulf %44, %45 : vector<16x128xf32>
    %47 = arith.truncf %46 : vector<16x128xf32> to vector<16x128xbf16>
    %c2 = arith.constant 2 : index
    %c0_21 = arith.constant 0 : index
    %c0_22 = arith.constant 0 : index
    %48 = vector.load %arg2[%c2, %c0_21, %c0_22] : memref<6x128x128xbf16, #tpu.memory_space<vmem>>, vector<1x128x128xbf16>
    %49 = vector.shape_cast %48 : vector<1x128x128xbf16> to vector<128x128xbf16>
    %cst_23 = arith.constant dense<0.000000e+00> : vector<16x128xf32>
    %50 = tpu.matmul %47, %49, %cst_23 {dimension_numbers = #tpu.dot_dimension_numbers<[1], [0], [0], [1], [0, 0, 1, 1], [], []>} : vector<16x128xbf16>, vector<128x128xbf16>, vector<16x128xf32> -> vector<16x128xf32>
    %51 = arith.addf %43, %50 : vector<16x128xf32>
    %c0_24 = arith.constant 0 : index
    %c0_25 = arith.constant 0 : index
    %c0_26 = arith.constant 0 : index
    %52 = vector.load %arg3[%c0_24, %c0_25, %c0_26] : memref<2x1x128xf32, #tpu.memory_space<vmem>>, vector<1x1x128xf32>
    %53 = vector.shape_cast %52 : vector<1x1x128xf32> to vector<1x128xf32>
    %54 = vector.broadcast %53 : vector<1x128xf32> to vector<16x128xf32>
    %55 = arith.addf %51, %54 : vector<16x128xf32>
    %cst_27 = arith.constant 0.000000e+00 : f32
    %56 = vector.broadcast %cst_27 : f32 to vector<16x128xf32>
    %57 = arith.maximumf %55, %56 : vector<16x128xf32>
    %c8_28 = arith.constant 8 : index
    %c0_29 = arith.constant 0 : index
    %58 = vector.load %arg9[%c8_28, %c0_29] : memref<32x128xf32, #tpu.memory_space<vmem>>, vector<16x128xf32>
    tpu.vector_store %arg9[%c8_28, %c0_29], %57 {strides = array<i32>} : memref<32x128xf32, #tpu.memory_space<vmem>>, vector<16x128xf32>,
    %c7_30 = arith.constant 7 : index
    %c0_31 = arith.constant 0 : index
    %59 = vector.load %arg9[%c7_30, %c0_31] : memref<32x128xf32, #tpu.memory_space<vmem>>, vector<16x128xf32>
    %60 = vector.broadcast %20 : vector<16x1xf32> to vector<16x128xf32>
    %61 = arith.mulf %59, %60 : vector<16x128xf32>
    %62 = arith.truncf %61 : vector<16x128xf32> to vector<16x128xbf16>
    %c0_32 = arith.constant 0 : index
    %c0_33 = arith.constant 0 : index
    %c0_34 = arith.constant 0 : index
    %63 = vector.load %arg4[%c0_32, %c0_33, %c0_34] : memref<6x128x128xbf16, #tpu.memory_space<vmem>>, vector<1x128x128xbf16>
    %64 = vector.shape_cast %63 : vector<1x128x128xbf16> to vector<128x128xbf16>
    %cst_35 = arith.constant dense<0.000000e+00> : vector<16x128xf32>
    %65 = tpu.matmul %62, %64, %cst_35 {dimension_numbers = #tpu.dot_dimension_numbers<[1], [0], [0], [1], [0, 0, 1, 1], [], []>} : vector<16x128xbf16>, vector<128x128xbf16>, vector<16x128xf32> -> vector<16x128xf32>
    %c8_36 = arith.constant 8 : index
    %c0_37 = arith.constant 0 : index
    %66 = vector.load %arg9[%c8_36, %c0_37] : memref<32x128xf32, #tpu.memory_space<vmem>>, vector<16x128xf32>
    %67 = arith.truncf %66 : vector<16x128xf32> to vector<16x128xbf16>
    %c1_38 = arith.constant 1 : index
    %c0_39 = arith.constant 0 : index
    %c0_40 = arith.constant 0 : index
    %68 = vector.load %arg4[%c1_38, %c0_39, %c0_40] : memref<6x128x128xbf16, #tpu.memory_space<vmem>>, vector<1x128x128xbf16>
    %69 = vector.shape_cast %68 : vector<1x128x128xbf16> to vector<128x128xbf16>
    %cst_41 = arith.constant dense<0.000000e+00> : vector<16x128xf32>
    %70 = tpu.matmul %67, %69, %cst_41 {dimension_numbers = #tpu.dot_dimension_numbers<[1], [0], [0], [1], [0, 0, 1, 1], [], []>} : vector<16x128xbf16>, vector<128x128xbf16>, vector<16x128xf32> -> vector<16x128xf32>
    %71 = arith.addf %65, %70 : vector<16x128xf32>
    %c9_42 = arith.constant 9 : index
    %c0_43 = arith.constant 0 : index
    %72 = vector.load %arg9[%c9_42, %c0_43] : memref<32x128xf32, #tpu.memory_space<vmem>>, vector<16x128xf32>
    %73 = vector.broadcast %24 : vector<16x1xf32> to vector<16x128xf32>
    %74 = arith.mulf %72, %73 : vector<16x128xf32>
    %75 = arith.truncf %74 : vector<16x128xf32> to vector<16x128xbf16>
    %c2_44 = arith.constant 2 : index
    %c0_45 = arith.constant 0 : index
    %c0_46 = arith.constant 0 : index
    %76 = vector.load %arg4[%c2_44, %c0_45, %c0_46] : memref<6x128x128xbf16, #tpu.memory_space<vmem>>, vector<1x128x128xbf16>
    %77 = vector.shape_cast %76 : vector<1x128x128xbf16> to vector<128x128xbf16>
    %cst_47 = arith.constant dense<0.000000e+00> : vector<16x128xf32>
    %78 = tpu.matmul %75, %77, %cst_47 {dimension_numbers = #tpu.dot_dimension_numbers<[1], [0], [0], [1], [0, 0, 1, 1], [], []>} : vector<16x128xbf16>, vector<128x128xbf16>, vector<16x128xf32> -> vector<16x128xf32>
    %79 = arith.addf %71, %78 : vector<16x128xf32>
    %c0_48 = arith.constant 0 : index
    %c0_49 = arith.constant 0 : index
    %c0_50 = arith.constant 0 : index
    %80 = vector.load %arg5[%c0_48, %c0_49, %c0_50] : memref<2x1x128xf32, #tpu.memory_space<vmem>>, vector<1x1x128xf32>
    %81 = vector.shape_cast %80 : vector<1x1x128xf32> to vector<1x128xf32>
    %82 = vector.broadcast %81 : vector<1x128xf32> to vector<16x128xf32>
    %83 = arith.addf %79, %82 : vector<16x128xf32>
    %84 = arith.addf %83, %29 : vector<16x128xf32>
    %cst_51 = arith.constant 0.000000e+00 : f32
    %85 = vector.broadcast %cst_51 : f32 to vector<16x128xf32>
    %86 = arith.maximumf %84, %85 : vector<16x128xf32>
    %c8_52 = arith.constant 8 : index
    %c0_53 = arith.constant 0 : index
    %87 = vector.load %arg9[%c8_52, %c0_53] : memref<32x128xf32, #tpu.memory_space<vmem>>, vector<16x128xf32>
    tpu.vector_store %arg9[%c8_52, %c0_53], %86 {strides = array<i32>} : memref<32x128xf32, #tpu.memory_space<vmem>>, vector<16x128xf32>,
    %c7_54 = arith.constant 7 : index
    %c0_55 = arith.constant 0 : index
    %88 = vector.load %arg9[%c7_54, %c0_55] : memref<32x128xf32, #tpu.memory_space<vmem>>, vector<16x128xf32>
    %89 = vector.broadcast %20 : vector<16x1xf32> to vector<16x128xf32>
    %90 = arith.mulf %88, %89 : vector<16x128xf32>
    %91 = arith.truncf %90 : vector<16x128xf32> to vector<16x128xbf16>
    %c3 = arith.constant 3 : index
    %c0_56 = arith.constant 0 : index
    %c0_57 = arith.constant 0 : index
    %92 = vector.load %arg2[%c3, %c0_56, %c0_57] : memref<6x128x128xbf16, #tpu.memory_space<vmem>>, vector<1x128x128xbf16>
    %93 = vector.shape_cast %92 : vector<1x128x128xbf16> to vector<128x128xbf16>
    %cst_58 = arith.constant dense<0.000000e+00> : vector<16x128xf32>
    %94 = tpu.matmul %91, %93, %cst_58 {dimension_numbers = #tpu.dot_dimension_numbers<[1], [0], [0], [1], [0, 0, 1, 1], [], []>} : vector<16x128xbf16>, vector<128x128xbf16>, vector<16x128xf32> -> vector<16x128xf32>
    %c8_59 = arith.constant 8 : index
    %c0_60 = arith.constant 0 : index
    %95 = vector.load %arg9[%c8_59, %c0_60] : memref<32x128xf32, #tpu.memory_space<vmem>>, vector<16x128xf32>
    %96 = arith.truncf %95 : vector<16x128xf32> to vector<16x128xbf16>
    %c4 = arith.constant 4 : index
    %c0_61 = arith.constant 0 : index
    %c0_62 = arith.constant 0 : index
    %97 = vector.load %arg2[%c4, %c0_61, %c0_62] : memref<6x128x128xbf16, #tpu.memory_space<vmem>>, vector<1x128x128xbf16>
    %98 = vector.shape_cast %97 : vector<1x128x128xbf16> to vector<128x128xbf16>
    %cst_63 = arith.constant dense<0.000000e+00> : vector<16x128xf32>
    %99 = tpu.matmul %96, %98, %cst_63 {dimension_numbers = #tpu.dot_dimension_numbers<[1], [0], [0], [1], [0, 0, 1, 1], [], []>} : vector<16x128xbf16>, vector<128x128xbf16>, vector<16x128xf32> -> vector<16x128xf32>
    %100 = arith.addf %94, %99 : vector<16x128xf32>
    %c9_64 = arith.constant 9 : index
    %c0_65 = arith.constant 0 : index
    %101 = vector.load %arg9[%c9_64, %c0_65] : memref<32x128xf32, #tpu.memory_space<vmem>>, vector<16x128xf32>
    %102 = vector.broadcast %24 : vector<16x1xf32> to vector<16x128xf32>
    %103 = arith.mulf %101, %102 : vector<16x128xf32>
    %104 = arith.truncf %103 : vector<16x128xf32> to vector<16x128xbf16>
    %c5 = arith.constant 5 : index
    %c0_66 = arith.constant 0 : index
    %c0_67 = arith.constant 0 : index
    %105 = vector.load %arg2[%c5, %c0_66, %c0_67] : memref<6x128x128xbf16, #tpu.memory_space<vmem>>, vector<1x128x128xbf16>
    %106 = vector.shape_cast %105 : vector<1x128x128xbf16> to vector<128x128xbf16>
    %cst_68 = arith.constant dense<0.000000e+00> : vector<16x128xf32>
    %107 = tpu.matmul %104, %106, %cst_68 {dimension_numbers = #tpu.dot_dimension_numbers<[1], [0], [0], [1], [0, 0, 1, 1], [], []>} : vector<16x128xbf16>, vector<128x128xbf16>, vector<16x128xf32> -> vector<16x128xf32>
    %108 = arith.addf %100, %107 : vector<16x128xf32>
    %c1_69 = arith.constant 1 : index
    %c0_70 = arith.constant 0 : index
    %c0_71 = arith.constant 0 : index
    %109 = vector.load %arg3[%c1_69, %c0_70, %c0_71] : memref<2x1x128xf32, #tpu.memory_space<vmem>>, vector<1x1x128xf32>
    %110 = vector.shape_cast %109 : vector<1x1x128xf32> to vector<1x128xf32>
    %111 = vector.broadcast %110 : vector<1x128xf32> to vector<16x128xf32>
    %112 = arith.addf %108, %111 : vector<16x128xf32>
    %cst_72 = arith.constant 0.000000e+00 : f32
    %113 = vector.broadcast %cst_72 : f32 to vector<16x128xf32>
    %114 = arith.maximumf %112, %113 : vector<16x128xf32>
    %c8_73 = arith.constant 8 : index
    %c0_74 = arith.constant 0 : index
    %115 = vector.load %arg9[%c8_73, %c0_74] : memref<32x128xf32, #tpu.memory_space<vmem>>, vector<16x128xf32>
    tpu.vector_store %arg9[%c8_73, %c0_74], %114 {strides = array<i32>} : memref<32x128xf32, #tpu.memory_space<vmem>>, vector<16x128xf32>,
    %c7_75 = arith.constant 7 : index
    %c0_76 = arith.constant 0 : index
    %116 = vector.load %arg9[%c7_75, %c0_76] : memref<32x128xf32, #tpu.memory_space<vmem>>, vector<16x128xf32>
    %117 = vector.broadcast %20 : vector<16x1xf32> to vector<16x128xf32>
    %118 = arith.mulf %116, %117 : vector<16x128xf32>
    %119 = arith.truncf %118 : vector<16x128xf32> to vector<16x128xbf16>
    %c3_77 = arith.constant 3 : index
    %c0_78 = arith.constant 0 : index
    %c0_79 = arith.constant 0 : index
    %120 = vector.load %arg4[%c3_77, %c0_78, %c0_79] : memref<6x128x128xbf16, #tpu.memory_space<vmem>>, vector<1x128x128xbf16>
    %121 = vector.shape_cast %120 : vector<1x128x128xbf16> to vector<128x128xbf16>
    %cst_80 = arith.constant dense<0.000000e+00> : vector<16x128xf32>
    %122 = tpu.matmul %119, %121, %cst_80 {dimension_numbers = #tpu.dot_dimension_numbers<[1], [0], [0], [1], [0, 0, 1, 1], [], []>} : vector<16x128xbf16>, vector<128x128xbf16>, vector<16x128xf32> -> vector<16x128xf32>
    %c8_81 = arith.constant 8 : index
    %c0_82 = arith.constant 0 : index
    %123 = vector.load %arg9[%c8_81, %c0_82] : memref<32x128xf32, #tpu.memory_space<vmem>>, vector<16x128xf32>
    %124 = arith.truncf %123 : vector<16x128xf32> to vector<16x128xbf16>
    %c4_83 = arith.constant 4 : index
    %c0_84 = arith.constant 0 : index
    %c0_85 = arith.constant 0 : index
    %125 = vector.load %arg4[%c4_83, %c0_84, %c0_85] : memref<6x128x128xbf16, #tpu.memory_space<vmem>>, vector<1x128x128xbf16>
    %126 = vector.shape_cast %125 : vector<1x128x128xbf16> to vector<128x128xbf16>
    %cst_86 = arith.constant dense<0.000000e+00> : vector<16x128xf32>
    %127 = tpu.matmul %124, %126, %cst_86 {dimension_numbers = #tpu.dot_dimension_numbers<[1], [0], [0], [1], [0, 0, 1, 1], [], []>} : vector<16x128xbf16>, vector<128x128xbf16>, vector<16x128xf32> -> vector<16x128xf32>
    %128 = arith.addf %122, %127 : vector<16x128xf32>
    %c9_87 = arith.constant 9 : index
    %c0_88 = arith.constant 0 : index
    %129 = vector.load %arg9[%c9_87, %c0_88] : memref<32x128xf32, #tpu.memory_space<vmem>>, vector<16x128xf32>
    %130 = vector.broadcast %24 : vector<16x1xf32> to vector<16x128xf32>
    %131 = arith.mulf %129, %130 : vector<16x128xf32>
    %132 = arith.truncf %131 : vector<16x128xf32> to vector<16x128xbf16>
    %c5_89 = arith.constant 5 : index
    %c0_90 = arith.constant 0 : index
    %c0_91 = arith.constant 0 : index
    %133 = vector.load %arg4[%c5_89, %c0_90, %c0_91] : memref<6x128x128xbf16, #tpu.memory_space<vmem>>, vector<1x128x128xbf16>
    %134 = vector.shape_cast %133 : vector<1x128x128xbf16> to vector<128x128xbf16>
    %cst_92 = arith.constant dense<0.000000e+00> : vector<16x128xf32>
    %135 = tpu.matmul %132, %134, %cst_92 {dimension_numbers = #tpu.dot_dimension_numbers<[1], [0], [0], [1], [0, 0, 1, 1], [], []>} : vector<16x128xbf16>, vector<128x128xbf16>, vector<16x128xf32> -> vector<16x128xf32>
    %136 = arith.addf %128, %135 : vector<16x128xf32>
    %c1_93 = arith.constant 1 : index
    %c0_94 = arith.constant 0 : index
    %c0_95 = arith.constant 0 : index
    %137 = vector.load %arg5[%c1_93, %c0_94, %c0_95] : memref<2x1x128xf32, #tpu.memory_space<vmem>>, vector<1x1x128xf32>
    %138 = vector.shape_cast %137 : vector<1x1x128xf32> to vector<1x128xf32>
    %139 = vector.broadcast %138 : vector<1x128xf32> to vector<16x128xf32>
    %140 = arith.addf %136, %139 : vector<16x128xf32>
    %141 = arith.addf %140, %86 : vector<16x128xf32>
    %cst_96 = arith.constant 0.000000e+00 : f32
    %142 = vector.broadcast %cst_96 : f32 to vector<16x128xf32>
    %143 = arith.maximumf %141, %142 : vector<16x128xf32>
    %144 = arith.truncf %143 : vector<16x128xf32> to vector<16x128xbf16>
    %c0_97 = arith.constant 0 : index
    %c0_98 = arith.constant 0 : index
    %145 = vector.load %arg6[%c0_97, %c0_98] : memref<128x128xbf16, #tpu.memory_space<vmem>>, vector<128x128xbf16>
    %cst_99 = arith.constant dense<0.000000e+00> : vector<16x128xf32>
    %146 = tpu.matmul %144, %145, %cst_99 {dimension_numbers = #tpu.dot_dimension_numbers<[1], [0], [0], [1], [0, 0, 1, 1], [], []>} : vector<16x128xbf16>, vector<128x128xbf16>, vector<16x128xf32> -> vector<16x128xf32>
    %c0_100 = arith.constant 0 : index
    %c0_101 = arith.constant 0 : index
    %147 = vector.load %arg7[%c0_100, %c0_101] : memref<1x128xf32, #tpu.memory_space<vmem>>, vector<1x128xf32>
    %148 = vector.broadcast %147 : vector<1x128xf32> to vector<16x128xf32>
    %149 = arith.addf %146, %148 : vector<16x128xf32>
    %cst_102 = arith.constant 0.000000e+00 : f32
    %150 = vector.broadcast %cst_102 : f32 to vector<16x128xf32>
    %151 = arith.maximumf %149, %150 : vector<16x128xf32>
    %152 = arith.truncf %151 : vector<16x128xf32> to vector<16x128xbf16>
    %c0_103 = arith.constant 0 : index
    %c0_104 = arith.constant 0 : index
    %153 = vector.load %arg8[%c0_103, %c0_104] : memref<16x128xbf16, #tpu.memory_space<vmem>>, vector<16x128xbf16>
    tpu.vector_store %arg8[%c0_103, %c0_104], %152 {strides = array<i32>} : memref<16x128xbf16, #tpu.memory_space<vmem>>, vector<16x128xbf16>,
    return
  }
  func.func @transform_0(%arg0: i32) -> (i32, i32) {
    %c0_i32 = arith.constant 0 : i32
    %c0_i32_0 = arith.constant 0 : i32
    return %arg0, %c0_i32 : i32, i32
  }
  func.func @transform_1(%arg0: i32) -> (i32, i32, i32) {
    %c0_i32 = arith.constant 0 : i32
    %c0_i32_0 = arith.constant 0 : i32
    %c0_i32_1 = arith.constant 0 : i32
    %c0_i32_2 = arith.constant 0 : i32
    return %c0_i32, %c0_i32_0, %c0_i32_1 : i32, i32, i32
  }
  func.func @transform_2(%arg0: i32) -> (i32, i32, i32) {
    %c0_i32 = arith.constant 0 : i32
    %c0_i32_0 = arith.constant 0 : i32
    %c0_i32_1 = arith.constant 0 : i32
    %c0_i32_2 = arith.constant 0 : i32
    return %c0_i32, %c0_i32_0, %c0_i32_1 : i32, i32, i32
  }
  func.func @transform_3(%arg0: i32) -> (i32, i32, i32) {
    %c0_i32 = arith.constant 0 : i32
    %c0_i32_0 = arith.constant 0 : i32
    %c0_i32_1 = arith.constant 0 : i32
    %c0_i32_2 = arith.constant 0 : i32
    return %c0_i32, %c0_i32_0, %c0_i32_1 : i32, i32, i32
  }
  func.func @transform_4(%arg0: i32) -> (i32, i32, i32) {
    %c0_i32 = arith.constant 0 : i32
    %c0_i32_0 = arith.constant 0 : i32
    %c0_i32_1 = arith.constant 0 : i32
    %c0_i32_2 = arith.constant 0 : i32
    return %c0_i32, %c0_i32_0, %c0_i32_1 : i32, i32, i32
  }
  func.func @transform_5(%arg0: i32) -> (i32, i32) {
    %c0_i32 = arith.constant 0 : i32
    %c0_i32_0 = arith.constant 0 : i32
    %c0_i32_1 = arith.constant 0 : i32
    return %c0_i32, %c0_i32_0 : i32, i32
  }
  func.func @transform_6(%arg0: i32) -> (i32, i32) {
    %c0_i32 = arith.constant 0 : i32
    %c0_i32_0 = arith.constant 0 : i32
    %c0_i32_1 = arith.constant 0 : i32
    return %c0_i32, %c0_i32_0 : i32, i32
  }
  func.func @transform_7(%arg0: i32) -> (i32, i32) {
    %c0_i32 = arith.constant 0 : i32
    %c0_i32_0 = arith.constant 0 : i32
    return %arg0, %c0_i32 : i32, i32
  }
}

module attributes {stable_mosaic.version = 11 : i64} {
  func.func @kernel(%arg0: i32, %arg1: memref<8x1024xbf16, #tpu.memory_space<vmem>>, %arg2: memref<1024x128xbf16, #tpu.memory_space<vmem>>, %arg3: memref<1x128xf32, #tpu.memory_space<vmem>>, %arg4: memref<1x128xf32, #tpu.memory_space<vmem>>, %arg5: memref<1x128xf32, #tpu.memory_space<vmem>>, %arg6: memref<128x128xbf16, #tpu.memory_space<vmem>>, %arg7: memref<1x128xf32, #tpu.memory_space<vmem>>, %arg8: memref<128x128xbf16, #tpu.memory_space<vmem>>, %arg9: memref<1x128xf32, #tpu.memory_space<vmem>>, %arg10: memref<8x128xf32, #tpu.memory_space<vmem>>, %arg11: memref<8x128xf32, #tpu.memory_space<vmem>>) attributes {dimension_semantics = [#tpu.dimension_semantics<parallel>], iteration_bounds = array<i64: 1>, scalar_prefetch = 0 : i64, scratch_operands = 0 : i64, tpu.core_type = #tpu.core_type<tc>, window_params = [{transform_indices = @transform_0, window_bounds = array<i64: 8, 1024>}, {pipeline_mode = #tpu.pipeline_mode<synchronous>, transform_indices = @transform_1, window_bounds = array<i64: 1024, 128>}, {pipeline_mode = #tpu.pipeline_mode<synchronous>, transform_indices = @transform_2, window_bounds = array<i64: 1, 128>}, {pipeline_mode = #tpu.pipeline_mode<synchronous>, transform_indices = @transform_3, window_bounds = array<i64: 1, 128>}, {pipeline_mode = #tpu.pipeline_mode<synchronous>, transform_indices = @transform_4, window_bounds = array<i64: 1, 128>}, {pipeline_mode = #tpu.pipeline_mode<synchronous>, transform_indices = @transform_5, window_bounds = array<i64: 128, 128>}, {pipeline_mode = #tpu.pipeline_mode<synchronous>, transform_indices = @transform_6, window_bounds = array<i64: 1, 128>}, {pipeline_mode = #tpu.pipeline_mode<synchronous>, transform_indices = @transform_7, window_bounds = array<i64: 128, 128>}, {pipeline_mode = #tpu.pipeline_mode<synchronous>, transform_indices = @transform_8, window_bounds = array<i64: 1, 128>}, {transform_indices = @transform_9, window_bounds = array<i64: 8, 128>}, {transform_indices = @transform_10, window_bounds = array<i64: 8, 128>}]} {
    %c0 = arith.constant 0 : index
    %c0_0 = arith.constant 0 : index
    %0 = vector.load %arg1[%c0, %c0_0] : memref<8x1024xbf16, #tpu.memory_space<vmem>>, vector<8x1024xbf16>
    %c0_1 = arith.constant 0 : index
    %c0_2 = arith.constant 0 : index
    %1 = vector.load %arg2[%c0_1, %c0_2] : memref<1024x128xbf16, #tpu.memory_space<vmem>>, vector<1024x128xbf16>
    %cst = arith.constant dense<0.000000e+00> : vector<8x128xf32>
    %2 = tpu.matmul %0, %1, %cst {dimension_numbers = #tpu.dot_dimension_numbers<[1], [0], [0], [1], [0, 0, 1, 1], [], []>} : vector<8x1024xbf16>, vector<1024x128xbf16>, vector<8x128xf32> -> vector<8x128xf32>
    %c0_3 = arith.constant 0 : index
    %c0_4 = arith.constant 0 : index
    %3 = vector.load %arg3[%c0_3, %c0_4] : memref<1x128xf32, #tpu.memory_space<vmem>>, vector<1x128xf32>
    %4 = vector.broadcast %3 : vector<1x128xf32> to vector<8x128xf32>
    %5 = arith.addf %2, %4 : vector<8x128xf32>
    %6 = tpu.iota {dimensions = array<i32: 1>} : vector<1x128xi32>
    %c32_i32 = arith.constant 32 : i32
    %7 = vector.broadcast %c32_i32 : i32 to vector<1x128xi32>
    %8 = arith.cmpi slt, %6, %7 : vector<1x128xi32>
    %9 = arith.extui %8 : vector<1x128xi1> to vector<1x128xi32>
    %10 = arith.sitofp %9 : vector<1x128xi32> to vector<1x128xf32>
    %c32_i32_5 = arith.constant 32 : i32
    %11 = vector.broadcast %c32_i32_5 : i32 to vector<1x128xi32>
    %12 = arith.cmpi sge, %6, %11 : vector<1x128xi32>
    %c64_i32 = arith.constant 64 : i32
    %13 = vector.broadcast %c64_i32 : i32 to vector<1x128xi32>
    %14 = arith.cmpi slt, %6, %13 : vector<1x128xi32>
    %15 = arith.andi %12, %14 : vector<1x128xi1>
    %16 = arith.extui %15 : vector<1x128xi1> to vector<1x128xi32>
    %17 = arith.sitofp %16 : vector<1x128xi32> to vector<1x128xf32>
    %18 = vector.broadcast %10 : vector<1x128xf32> to vector<8x128xf32>
    %19 = arith.mulf %5, %18 : vector<8x128xf32>
    %cst_6 = arith.constant dense<0.000000e+00> : vector<8xf32>
    %20 = vector.multi_reduction <add>, %19, %cst_6 [1] : vector<8x128xf32> to vector<8xf32>
    %21 = vector.shape_cast %20 : vector<8xf32> to vector<8x1xf32>
    %cst_7 = arith.constant 3.125000e-02 : f32
    %22 = vector.broadcast %cst_7 : f32 to vector<8x1xf32>
    %23 = arith.mulf %21, %22 : vector<8x1xf32>
    %24 = vector.broadcast %17 : vector<1x128xf32> to vector<8x128xf32>
    %25 = arith.mulf %5, %24 : vector<8x128xf32>
    %cst_8 = arith.constant dense<0.000000e+00> : vector<8xf32>
    %26 = vector.multi_reduction <add>, %25, %cst_8 [1] : vector<8x128xf32> to vector<8xf32>
    %27 = vector.shape_cast %26 : vector<8xf32> to vector<8x1xf32>
    %cst_9 = arith.constant 3.125000e-02 : f32
    %28 = vector.broadcast %cst_9 : f32 to vector<8x1xf32>
    %29 = arith.mulf %27, %28 : vector<8x1xf32>
    %30 = vector.broadcast %23 : vector<8x1xf32> to vector<8x128xf32>
    %31 = vector.broadcast %10 : vector<1x128xf32> to vector<8x128xf32>
    %32 = arith.mulf %30, %31 : vector<8x128xf32>
    %33 = vector.broadcast %29 : vector<8x1xf32> to vector<8x128xf32>
    %34 = vector.broadcast %17 : vector<1x128xf32> to vector<8x128xf32>
    %35 = arith.mulf %33, %34 : vector<8x128xf32>
    %36 = arith.addf %32, %35 : vector<8x128xf32>
    %37 = arith.subf %5, %36 : vector<8x128xf32>
    %38 = vector.broadcast %10 : vector<1x128xf32> to vector<8x128xf32>
    %39 = arith.mulf %37, %38 : vector<8x128xf32>
    %40 = arith.mulf %39, %39 : vector<8x128xf32>
    %cst_10 = arith.constant dense<0.000000e+00> : vector<8xf32>
    %41 = vector.multi_reduction <add>, %40, %cst_10 [1] : vector<8x128xf32> to vector<8xf32>
    %42 = vector.shape_cast %41 : vector<8xf32> to vector<8x1xf32>
    %cst_11 = arith.constant 3.125000e-02 : f32
    %43 = vector.broadcast %cst_11 : f32 to vector<8x1xf32>
    %44 = arith.mulf %42, %43 : vector<8x1xf32>
    %45 = vector.broadcast %17 : vector<1x128xf32> to vector<8x128xf32>
    %46 = arith.mulf %37, %45 : vector<8x128xf32>
    %47 = arith.mulf %46, %46 : vector<8x128xf32>
    %cst_12 = arith.constant dense<0.000000e+00> : vector<8xf32>
    %48 = vector.multi_reduction <add>, %47, %cst_12 [1] : vector<8x128xf32> to vector<8xf32>
    %49 = vector.shape_cast %48 : vector<8xf32> to vector<8x1xf32>
    %cst_13 = arith.constant 3.125000e-02 : f32
    %50 = vector.broadcast %cst_13 : f32 to vector<8x1xf32>
    %51 = arith.mulf %49, %50 : vector<8x1xf32>
    %cst_14 = arith.constant 9.99999974E-6 : f32
    %52 = vector.broadcast %cst_14 : f32 to vector<8x1xf32>
    %53 = arith.addf %44, %52 : vector<8x1xf32>
    %54 = math.rsqrt %53 : vector<8x1xf32>
    %55 = vector.broadcast %54 : vector<8x1xf32> to vector<8x128xf32>
    %56 = vector.broadcast %10 : vector<1x128xf32> to vector<8x128xf32>
    %57 = arith.mulf %55, %56 : vector<8x128xf32>
    %cst_15 = arith.constant 9.99999974E-6 : f32
    %58 = vector.broadcast %cst_15 : f32 to vector<8x1xf32>
    %59 = arith.addf %51, %58 : vector<8x1xf32>
    %60 = math.rsqrt %59 : vector<8x1xf32>
    %61 = vector.broadcast %60 : vector<8x1xf32> to vector<8x128xf32>
    %62 = vector.broadcast %17 : vector<1x128xf32> to vector<8x128xf32>
    %63 = arith.mulf %61, %62 : vector<8x128xf32>
    %64 = arith.addf %57, %63 : vector<8x128xf32>
    %65 = arith.mulf %37, %64 : vector<8x128xf32>
    %c0_16 = arith.constant 0 : index
    %c0_17 = arith.constant 0 : index
    %66 = vector.load %arg4[%c0_16, %c0_17] : memref<1x128xf32, #tpu.memory_space<vmem>>, vector<1x128xf32>
    %67 = vector.broadcast %66 : vector<1x128xf32> to vector<8x128xf32>
    %68 = arith.mulf %65, %67 : vector<8x128xf32>
    %c0_18 = arith.constant 0 : index
    %c0_19 = arith.constant 0 : index
    %69 = vector.load %arg5[%c0_18, %c0_19] : memref<1x128xf32, #tpu.memory_space<vmem>>, vector<1x128xf32>
    %70 = vector.broadcast %69 : vector<1x128xf32> to vector<8x128xf32>
    %71 = arith.addf %68, %70 : vector<8x128xf32>
    %cst_20 = arith.constant 0.000000e+00 : f32
    %72 = vector.broadcast %cst_20 : f32 to vector<8x128xf32>
    %73 = arith.maximumf %71, %72 : vector<8x128xf32>
    %74 = arith.truncf %73 : vector<8x128xf32> to vector<8x128xbf16>
    %c0_21 = arith.constant 0 : index
    %c0_22 = arith.constant 0 : index
    %75 = vector.load %arg6[%c0_21, %c0_22] : memref<128x128xbf16, #tpu.memory_space<vmem>>, vector<128x128xbf16>
    %cst_23 = arith.constant dense<0.000000e+00> : vector<8x128xf32>
    %76 = tpu.matmul %74, %75, %cst_23 {dimension_numbers = #tpu.dot_dimension_numbers<[1], [0], [0], [1], [0, 0, 1, 1], [], []>} : vector<8x128xbf16>, vector<128x128xbf16>, vector<8x128xf32> -> vector<8x128xf32>
    %c0_24 = arith.constant 0 : index
    %c0_25 = arith.constant 0 : index
    %77 = vector.load %arg7[%c0_24, %c0_25] : memref<1x128xf32, #tpu.memory_space<vmem>>, vector<1x128xf32>
    %78 = vector.broadcast %77 : vector<1x128xf32> to vector<8x128xf32>
    %79 = arith.addf %76, %78 : vector<8x128xf32>
    %c0_26 = arith.constant 0 : index
    %c0_27 = arith.constant 0 : index
    %80 = vector.load %arg10[%c0_26, %c0_27] : memref<8x128xf32, #tpu.memory_space<vmem>>, vector<8x128xf32>
    tpu.vector_store %arg10[%c0_26, %c0_27], %79 {strides = array<i32>} : memref<8x128xf32, #tpu.memory_space<vmem>>, vector<8x128xf32>,
    %c0_28 = arith.constant 0 : index
    %c0_29 = arith.constant 0 : index
    %81 = vector.load %arg8[%c0_28, %c0_29] : memref<128x128xbf16, #tpu.memory_space<vmem>>, vector<128x128xbf16>
    %cst_30 = arith.constant dense<0.000000e+00> : vector<8x128xf32>
    %82 = tpu.matmul %74, %81, %cst_30 {dimension_numbers = #tpu.dot_dimension_numbers<[1], [0], [0], [1], [0, 0, 1, 1], [], []>} : vector<8x128xbf16>, vector<128x128xbf16>, vector<8x128xf32> -> vector<8x128xf32>
    %c0_31 = arith.constant 0 : index
    %c0_32 = arith.constant 0 : index
    %83 = vector.load %arg9[%c0_31, %c0_32] : memref<1x128xf32, #tpu.memory_space<vmem>>, vector<1x128xf32>
    %84 = vector.broadcast %83 : vector<1x128xf32> to vector<8x128xf32>
    %85 = arith.addf %82, %84 : vector<8x128xf32>
    %c0_33 = arith.constant 0 : index
    %c0_34 = arith.constant 0 : index
    %86 = vector.load %arg11[%c0_33, %c0_34] : memref<8x128xf32, #tpu.memory_space<vmem>>, vector<8x128xf32>
    tpu.vector_store %arg11[%c0_33, %c0_34], %85 {strides = array<i32>} : memref<8x128xf32, #tpu.memory_space<vmem>>, vector<8x128xf32>,
    return
  }
  func.func @transform_0(%arg0: i32) -> (i32, i32) {
    %c0_i32 = arith.constant 0 : i32
    %c0_i32_0 = arith.constant 0 : i32
    return %arg0, %c0_i32 : i32, i32
  }
  func.func @transform_1(%arg0: i32) -> (i32, i32) {
    %c0_i32 = arith.constant 0 : i32
    %c0_i32_0 = arith.constant 0 : i32
    %c0_i32_1 = arith.constant 0 : i32
    return %c0_i32, %c0_i32_0 : i32, i32
  }
  func.func @transform_2(%arg0: i32) -> (i32, i32) {
    %c0_i32 = arith.constant 0 : i32
    %c0_i32_0 = arith.constant 0 : i32
    %c0_i32_1 = arith.constant 0 : i32
    return %c0_i32, %c0_i32_0 : i32, i32
  }
  func.func @transform_3(%arg0: i32) -> (i32, i32) {
    %c0_i32 = arith.constant 0 : i32
    %c0_i32_0 = arith.constant 0 : i32
    %c0_i32_1 = arith.constant 0 : i32
    return %c0_i32, %c0_i32_0 : i32, i32
  }
  func.func @transform_4(%arg0: i32) -> (i32, i32) {
    %c0_i32 = arith.constant 0 : i32
    %c0_i32_0 = arith.constant 0 : i32
    %c0_i32_1 = arith.constant 0 : i32
    return %c0_i32, %c0_i32_0 : i32, i32
  }
  func.func @transform_5(%arg0: i32) -> (i32, i32) {
    %c0_i32 = arith.constant 0 : i32
    %c0_i32_0 = arith.constant 0 : i32
    %c0_i32_1 = arith.constant 0 : i32
    return %c0_i32, %c0_i32_0 : i32, i32
  }
  func.func @transform_6(%arg0: i32) -> (i32, i32) {
    %c0_i32 = arith.constant 0 : i32
    %c0_i32_0 = arith.constant 0 : i32
    %c0_i32_1 = arith.constant 0 : i32
    return %c0_i32, %c0_i32_0 : i32, i32
  }
  func.func @transform_7(%arg0: i32) -> (i32, i32) {
    %c0_i32 = arith.constant 0 : i32
    %c0_i32_0 = arith.constant 0 : i32
    %c0_i32_1 = arith.constant 0 : i32
    return %c0_i32, %c0_i32_0 : i32, i32
  }
  func.func @transform_8(%arg0: i32) -> (i32, i32) {
    %c0_i32 = arith.constant 0 : i32
    %c0_i32_0 = arith.constant 0 : i32
    %c0_i32_1 = arith.constant 0 : i32
    return %c0_i32, %c0_i32_0 : i32, i32
  }
  func.func @transform_9(%arg0: i32) -> (i32, i32) {
    %c0_i32 = arith.constant 0 : i32
    %c0_i32_0 = arith.constant 0 : i32
    return %arg0, %c0_i32 : i32, i32
  }
  func.func @transform_10(%arg0: i32) -> (i32, i32) {
    %c0_i32 = arith.constant 0 : i32
    %c0_i32_0 = arith.constant 0 : i32
    return %arg0, %c0_i32 : i32, i32
  }
}

</mosaic_0001>

<bundles_post_ra>
// kernel: prediction_network_forward.3
= control target key start
LH: loop header
LB: loop body
LE: loop exit
PB: predicated region body
PF: predicated region fallthrough
CT: control target
= control target key end

     0   :  { %vm1372_vm4 = vmmov 0   ;;  %s1738_s1 = inlined_call_operand.vmem [shape: bf16[1024,128], index: 1, kind: input, shape index: {}]   ;;  %s1739_s0 = inlined_call_operand.vmem [shape: bf16[8,1024], index: 0, kind: input, shape index: {}]   ;;  %s1740_s2 = inlined_call_operand.vmem [shape: f32[1,128], index: 2, kind: input, shape index: {}]   ;;  %s1741_s5 = inlined_call_operand.vmem [shape: bf16[128,128], index: 5, kind: input, shape index: {}]   ;;  %s1742_s7 = inlined_call_operand.vmem [shape: bf16[128,128], index: 7, kind: input, shape index: {}]   ;;  %s1743_s3 = inlined_call_operand.vmem [shape: f32[1,128], index: 3, kind: input, shape index: {}]   ;;  %s1744_s4 = inlined_call_operand.vmem [shape: f32[1,128], index: 4, kind: input, shape index: {}]   ;;  %s1745_s6 = inlined_call_operand.vmem [shape: f32[1,128], index: 6, kind: input, shape index: {}]   ;;  %s1746_s8 = inlined_call_operand.vmem [shape: f32[1,128], index: 8, kind: input, shape index: {}]   ;;  %s1747_s9 = inlined_call_operand.vmem [shape: f32[8,128], index: 9, kind: output, shape index: {0}]   ;;  %s1748_s10 = inlined_call_operand.vmem [shape: f32[8,128], index: 10, kind: output, shape index: {1}]  }
   0x1   :  { %v1279_v0 = vld [vmem:[%s1738_s1 + $0x40] sm:$0xff]   ;;  %v1283_v4 = vld [vmem:[%s1738_s1 + $0x48] sm:$0xff]   ;;  %v1287_v8 = vld [vmem:[%s1738_s1 + $0x50] sm:$0xff]  }
   0x2   :  { %v1280_v1 = vld [vmem:[%s1738_s1 + $0xc0] sm:$0xff]   ;;  %1131 = vmatprep.subr.bf16.mxu0 %v1279_v0  ;;  %v1284_v5 = vld [vmem:[%s1738_s1 + $0xc8] sm:$0xff]   ;;  %v1288_v9 = vld [vmem:[%s1738_s1 + $0xd0] sm:$0xff]  }
   0x3   :  { %v1281_v2 = vld [vmem:[%s1738_s1] sm:$0xff]   ;;  %1153 = vmatprep.subr.bf16.mxu1 %v1280_v1  ;;  %v1285_v6 = vld [vmem:[%s1738_s1 + $0x8] sm:$0xff]   ;;  %v1289_v10 = vld [vmem:[%s1738_s1 + $0x10] sm:$0xff]  }
   0x4   :  { %v1282_v3 = vld [vmem:[%s1738_s1 + $0x80] sm:$0xff]   ;;  %1132 = vmatpush3.bf16.msra.mxu0 %v1281_v2  ;;  %v1286_v7 = vld [vmem:[%s1738_s1 + $0x88] sm:$0xff]   ;;  %v1290_v11 = vld [vmem:[%s1738_s1 + $0x90] sm:$0xff]  }
   0x5   :  { %1154 = vmatpush3.bf16.msra.mxu1 %v1282_v3  ;;  %1133 = vmatprep.subr.bf16.mxu0 %v1283_v4  ;;  %v1291_v12 = vld [vmem:[%s1738_s1 + $0x58] sm:$0xff]   ;;  %v1295_v16 = vld [vmem:[%s1738_s1 + $0x60] sm:$0xff]   ;;  %v1299_v20 = vld [vmem:[%s1738_s1 + $0x68] sm:$0xff]  }
   0x6   :  { %1155 = vmatprep.subr.bf16.mxu1 %v1284_v5  ;;  %v1292_v13 = vld [vmem:[%s1738_s1 + $0xd8] sm:$0xff]   ;;  %v1296_v17 = vld [vmem:[%s1738_s1 + $0xe0] sm:$0xff]   ;;  %v1300_v21 = vld [vmem:[%s1738_s1 + $0xe8] sm:$0xff]  }
   0x7   :  { %v1293_v14 = vld [vmem:[%s1738_s1 + $0x18] sm:$0xff]   ;;  %v1297_v18 = vld [vmem:[%s1738_s1 + $0x20] sm:$0xff]   ;;  %v1301_v22 = vld [vmem:[%s1738_s1 + $0x28] sm:$0xff]  }
   0x8   :  { %1134 = vmatpush3.bf16.msra.mxu0 %v1285_v6  ;;  %v1294_v15 = vld [vmem:[%s1738_s1 + $0x98] sm:$0xff]   ;;  %v1298_v19 = vld [vmem:[%s1738_s1 + $0xa0] sm:$0xff]   ;;  %v1302_v23 = vld [vmem:[%s1738_s1 + $0xa8] sm:$0xff]  }
   0x9   :  { %1156 = vmatpush3.bf16.msra.mxu1 %v1286_v7  ;;  %1135 = vmatprep.subr.bf16.mxu0 %v1287_v8  ;;  %v1303_v24 = vld [vmem:[%s1738_s1 + $0x70] sm:$0xff]   ;;  %v1307_v28 = vld [vmem:[%s1738_s1 + $0x78] sm:$0xff]   ;;  %v35_v32 = vld [vmem:[%s1739_s0] sm:$0xff] }
   0xa   :  { %1157 = vmatprep.subr.bf16.mxu1 %v1288_v9  ;;  %v1304_v25 = vld [vmem:[%s1738_s1 + $0xf0] sm:$0xff]   ;;  %v1308_v29 = vld [vmem:[%s1738_s1 + $0xf8] sm:$0xff]   ;;  %v36_v33 = vld [vmem:[%s1739_s0 + $0x8] sm:$0xff]  ;;  %v1037_v34 = vcombine.low %v35_v32, %v35_v32  ;;  %v1038_v35 = vcombine.high %v35_v32, %v35_v32 }
   0xb   :  { %v1305_v26 = vld [vmem:[%s1738_s1 + $0x30] sm:$0xff]   ;;  %v1309_v30 = vld [vmem:[%s1738_s1 + $0x38] sm:$0xff]   ;;  %v1039_v36 = vcombine.low %v36_v33, %v36_v33  ;;  %v1040_v37 = vcombine.high %v36_v33, %v36_v33  ;;  %v1315_v38 = vld [vmem:[%s1738_s1 + $0x140] sm:$0xff]  }
   0xc   :  { %1136 = vmatpush3.bf16.msra.mxu0 %v1289_v10  ;;  %v1306_v27 = vld [vmem:[%s1738_s1 + $0xb0] sm:$0xff]   ;;  %v1310_v31 = vld [vmem:[%s1738_s1 + $0xb8] sm:$0xff]   ;;  %v1316_v39 = vld [vmem:[%s1738_s1 + $0x1c0] sm:$0xff]   ;;  %618 = vmatprep.mubr.bf16.mxu0 %v1038_v35 }
   0xd   :  { %1158 = vmatpush3.bf16.msra.mxu1 %v1290_v11  ;;  %1137 = vmatprep.subr.bf16.mxu0 %v1291_v12  ;;  %v1317_v40 = vld [vmem:[%s1738_s1 + $0x100] sm:$0xff]   ;;  %v1319_v42 = vld [vmem:[%s1738_s1 + $0x148] sm:$0xff]   ;;  %v1323_v46 = vld [vmem:[%s1738_s1 + $0x150] sm:$0xff]   ;;  %v1371_v12 = vmov 0.0  }
   0xe   :  { %1159 = vmatprep.subr.bf16.mxu1 %v1292_v13  ;;  %658 = vmatprep.mubr.bf16.mxu1 %v1040_v37  ;;  %v1318_v41 = vld [vmem:[%s1738_s1 + $0x180] sm:$0xff]   ;;  %v1320_v43 = vld [vmem:[%s1738_s1 + $0x1c8] sm:$0xff]   ;;  %v1324_v47 = vld [vmem:[%s1738_s1 + $0x1d0] sm:$0xff]  }
   0xf   :  { %v1321_v44 = vld [vmem:[%s1738_s1 + $0x108] sm:$0xff]   ;;  %v1325_v48 = vld [vmem:[%s1738_s1 + $0x110] sm:$0xff]   ;;  %v1327_v50 = vld [vmem:[%s1738_s1 + $0x158] sm:$0xff]  }
  0x10   :  { %1138 = vmatpush3.bf16.msra.mxu0 %v1293_v14  ;;  %v1322_v45 = vld [vmem:[%s1738_s1 + $0x188] sm:$0xff]   ;;  %v1326_v49 = vld [vmem:[%s1738_s1 + $0x190] sm:$0xff]   ;;  %v1328_v51 = vld [vmem:[%s1738_s1 + $0x1d8] sm:$0xff]  }
  0x11   :  { %1160 = vmatpush3.bf16.msra.mxu1 %v1294_v15  ;;  %1139 = vmatprep.subr.bf16.mxu0 %v1295_v16  ;;  %v1329_v52 = vld [vmem:[%s1738_s1 + $0x118] sm:$0xff]   ;;  %v1331_v54 = vld [vmem:[%s1738_s1 + $0x160] sm:$0xff]   ;;  %v1335_v58 = vld [vmem:[%s1738_s1 + $0x168] sm:$0xff]  }
  0x12   :  { %1161 = vmatprep.subr.bf16.mxu1 %v1296_v17  ;;  %v1330_v53 = vld [vmem:[%s1738_s1 + $0x198] sm:$0xff]   ;;  %v1332_v55 = vld [vmem:[%s1738_s1 + $0x1e0] sm:$0xff]   ;;  %v1336_v59 = vld [vmem:[%s1738_s1 + $0x1e8] sm:$0xff]  }
  0x13   :  { %v1333_v56 = vld [vmem:[%s1738_s1 + $0x120] sm:$0xff]   ;;  %v1337_v60 = vld [vmem:[%s1738_s1 + $0x128] sm:$0xff]   ;;  %v1339_v62 = vld [vmem:[%s1738_s1 + $0x170] sm:$0xff]  }
  0x14   :  { %1140 = vmatpush3.bf16.msra.mxu0 %v1297_v18  ;;  %v1334_v57 = vld [vmem:[%s1738_s1 + $0x1a0] sm:$0xff]   ;;  %v1338_v61 = vld [vmem:[%s1738_s1 + $0x1a8] sm:$0xff]   ;;  %v1340_v63 = vld [vmem:[%s1738_s1 + $0x1f0] sm:$0xff]  }
  0x15   :  { %1162 = vmatpush3.bf16.msra.mxu1 %v1298_v19  ;;  %1141 = vmatprep.subr.bf16.mxu0 %v1299_v20  ;;  %v1341_v0 = vld [vmem:[%s1738_s1 + $0x130] sm:$0xff]   ;;  %v1343_v2 = vld [vmem:[%s1738_s1 + $0x178] sm:$0xff]   ;;  %v1036_v15 = vld [vmem:[%s1740_s2] ss:$0 sm:$0xff] }
  0x16   :  { %1163 = vmatprep.subr.bf16.mxu1 %v1300_v21  ;;  %v1342_v1 = vld [vmem:[%s1738_s1 + $0x1b0] sm:$0xff]   ;;  %v1344_v3 = vld [vmem:[%s1738_s1 + $0x1f8] sm:$0xff]  }
  0x17   :  { %v1345_v4 = vld [vmem:[%s1738_s1 + $0x138] sm:$0xff]   ;;  %v37_v6 = vld [vmem:[%s1739_s0 + $0x10] sm:$0xff] }
  0x18   :  { %1142 = vmatpush3.bf16.msra.mxu0 %v1301_v22  ;;  %v1346_v5 = vld [vmem:[%s1738_s1 + $0x1b8] sm:$0xff]   ;;  %v1041_v7 = vcombine.low %v37_v6, %v37_v6  ;;  %v1042_v8 = vcombine.high %v37_v6, %v37_v6 }
  0x19   :  { %1164 = vmatpush3.bf16.msra.mxu1 %v1302_v23  ;;  %1143 = vmatprep.subr.bf16.mxu0 %v1303_v24  ;;  %v38_v9 = vld [vmem:[%s1739_s0 + $0x18] sm:$0xff] }
  0x1a   :  { %1165 = vmatprep.subr.bf16.mxu1 %v1304_v25  ;;  %v1043_v10 = vcombine.low %v38_v9, %v38_v9  ;;  %v1044_v11 = vcombine.high %v38_v9, %v38_v9  ;;  %v1365_v6 = vld [vmem:[%s1741_s5 + $0x38] sm:$0xff]  }
  0x1c   :  { %1144 = vmatpush3.bf16.msra.mxu0 %v1305_v26  ;;  %v746_v26 = vlaneseq }
  0x1d   :  { %1166 = vmatpush3.bf16.msra.mxu1 %v1306_v27  ;;  %1145 = vmatprep.subr.bf16.mxu0 %v1307_v28 }
  0x1e   :  { %1167 = vmatprep.subr.bf16.mxu1 %v1308_v29  ;;  %v747_v27 = vand.u32 127, %v746_v26  ;;  %v1113_v26 = vld [vmem:[%s1745_s6] ss:$0 sm:$0xff] }
  0x20   :  { %1146 = vmatpush3.bf16.msra.mxu0 %v1309_v30  ;;  %vm748_vm0 = vcmp.lt.s32.totalorder %v747_v27, 32  ;;  %vm751_vm1 = vcmp.ge.s32.totalorder %v747_v27, 32  ;;  %vm752_vm2 = vcmp.lt.s32.totalorder %v747_v27, 64  ;;  %v1122_v27 = vld [vmem:[%s1746_s8] ss:$0 sm:$0xff] }
  0x21   :  { %1168 = vmatpush3.bf16.msra.mxu1 %v1310_v31  ;;  %1175 = vmatprep.subr.bf16.mxu0 %v1315_v38  ;;  %vm753_vm3 = vmand %vm751_vm1, %vm752_vm2 }
  0x22   :  { %1197 = vmatprep.subr.bf16.mxu1 %v1316_v39  ;;  %v1638_v39 = vsel %vm748_vm0, 1.0, %v1371_v12 }
  0x23   :  { %619 = vmatmul.mubr.bf16.vlgmr.msra.gmra.mrb[0].mxu0 %v1037_v34 }
  0x24   :  { %659 = vmatmul.mubr.bf16.vlgmr.msra.gmra.mrb[0].mxu1 %v1039_v36  ;;  %1176 = vmatpush3.bf16.msra.mxu0 %v1317_v40 }
  0x25   :  { %1198 = vmatpush3.bf16.msra.mxu1 %v1318_v41  ;;  %1177 = vmatprep.subr.bf16.mxu0 %v1319_v42  ;;  %v1642_v42 = vsel %vm753_vm3, 1.0, %v1371_v12 }
  0x26   :  { %1199 = vmatprep.subr.bf16.mxu1 %v1320_v43  ;;  %698 = vmatprep.mubr.bf16.mxu0 %v1042_v8 }
  0x27   :  { %738 = vmatprep.mubr.bf16.mxu1 %v1044_v11 }
  0x28   :  { %1178 = vmatpush3.bf16.msra.mxu0 %v1321_v44 }
  0x29   :  { %1200 = vmatpush3.bf16.msra.mxu1 %v1322_v45  ;;  %1179 = vmatprep.subr.bf16.mxu0 %v1323_v46 }
  0x2a   :  { %1201 = vmatprep.subr.bf16.mxu1 %v1324_v47 }
  0x2c   :  { %1180 = vmatpush3.bf16.msra.mxu0 %v1325_v48 }
  0x2d   :  { %1202 = vmatpush3.bf16.msra.mxu1 %v1326_v49  ;;  %1181 = vmatprep.subr.bf16.mxu0 %v1327_v50 }
  0x2e   :  { %1203 = vmatprep.subr.bf16.mxu1 %v1328_v51 }
  0x30   :  { %1182 = vmatpush3.bf16.msra.mxu0 %v1329_v52 }
  0x31   :  { %1204 = vmatpush3.bf16.msra.mxu1 %v1330_v53  ;;  %1183 = vmatprep.subr.bf16.mxu0 %v1331_v54 }
  0x32   :  { %1205 = vmatprep.subr.bf16.mxu1 %v1332_v55 }
  0x34   :  { %1184 = vmatpush3.bf16.msra.mxu0 %v1333_v56  ;;  %v1351_v56 = vld [vmem:[%s1741_s5] sm:$0xff]  }
  0x35   :  { %1206 = vmatpush3.bf16.msra.mxu1 %v1334_v57  ;;  %1185 = vmatprep.subr.bf16.mxu0 %v1335_v58  ;;  %v1352_v57 = vld [vmem:[%s1742_s7] sm:$0xff]   ;;  %v1353_v58 = vld [vmem:[%s1741_s5 + $0x8] sm:$0xff]  }
  0x36   :  { %1207 = vmatprep.subr.bf16.mxu1 %v1336_v59  ;;  %v1354_v59 = vld [vmem:[%s1742_s7 + $0x8] sm:$0xff]  }
  0x38   :  { %1186 = vmatpush3.bf16.msra.mxu0 %v1337_v60  ;;  %v1355_v60 = vld [vmem:[%s1741_s5 + $0x10] sm:$0xff]  }
  0x39   :  { %1208 = vmatpush3.bf16.msra.mxu1 %v1338_v61  ;;  %1187 = vmatprep.subr.bf16.mxu0 %v1339_v62  ;;  %v1356_v61 = vld [vmem:[%s1742_s7 + $0x10] sm:$0xff]   ;;  %v1357_v62 = vld [vmem:[%s1741_s5 + $0x18] sm:$0xff]  }
  0x3a   :  { %1209 = vmatprep.subr.bf16.mxu1 %v1340_v63  ;;  %v1358_v63 = vld [vmem:[%s1742_s7 + $0x18] sm:$0xff]  }
  0x3c   :  { %1188 = vmatpush3.bf16.msra.mxu0 %v1341_v0  ;;  %v1359_v0 = vld [vmem:[%s1741_s5 + $0x20] sm:$0xff]  }
  0x3d   :  { %1210 = vmatpush3.bf16.msra.mxu1 %v1342_v1  ;;  %1189 = vmatprep.subr.bf16.mxu0 %v1343_v2  ;;  %v1360_v1 = vld [vmem:[%s1742_s7 + $0x20] sm:$0xff]   ;;  %v1361_v2 = vld [vmem:[%s1741_s5 + $0x28] sm:$0xff]  }
  0x3e   :  { %1211 = vmatprep.subr.bf16.mxu1 %v1344_v3  ;;  %v1362_v3 = vld [vmem:[%s1742_s7 + $0x28] sm:$0xff]  }
  0x40   :  { %1190 = vmatpush3.bf16.msra.mxu0 %v1345_v4  ;;  %v1363_v4 = vld [vmem:[%s1741_s5 + $0x30] sm:$0xff]  }
  0x41   :  { %1212 = vmatpush3.bf16.msra.mxu1 %v1346_v5  ;;  %1237 = vmatprep.subr.bf16.mxu0 %v1371_v12  ;;  %v1364_v5 = vld [vmem:[%s1742_s7 + $0x30] sm:$0xff]  }
  0x42   :  { %1257 = vmatprep.subr.bf16.mxu1 %v1371_v12 }
  0x43   :  { %699 = vmatmul.mubr.bf16.vlgmr.msra.gmra.mrb[4].mxu0 %v1041_v7  ;;  %v1366_v7 = vld [vmem:[%s1742_s7 + $0x38] sm:$0xff]  }
  0x44   :  { %739 = vmatmul.mubr.bf16.vlgmr.msra.gmra.mrb[4].mxu1 %v1043_v10  ;;  %1238 = vmatpush3.bf16.msra.mxu0 %v1351_v56 }
  0x45   :  { %1258 = vmatpush3.bf16.msra.mxu1 %v1352_v57  ;;  %1239 = vmatprep.subr.bf16.mxu0 %v1371_v12 }
  0x46   :  { %1259 = vmatprep.subr.bf16.mxu1 %v1371_v12  ;;  %1253 = vmatprep.mubr.msk.bf16.mxu0 %vm1372_vm4, %v1371_v12 }
  0x47   :  { %1273 = vmatprep.mubr.msk.bf16.mxu1 %vm1372_vm4, %v1371_v12 }
  0x48   :  { %1240 = vmatpush3.bf16.msra.mxu0 %v1353_v58 }
  0x49   :  { %1260 = vmatpush3.bf16.msra.mxu1 %v1354_v59  ;;  %1241 = vmatprep.subr.bf16.mxu0 %v1371_v12 }
  0x4a   :  { %1261 = vmatprep.subr.bf16.mxu1 %v1371_v12 }
  0x4c   :  { %1242 = vmatpush3.bf16.msra.mxu0 %v1355_v60 }
  0x4d   :  { %1262 = vmatpush3.bf16.msra.mxu1 %v1356_v61  ;;  %1243 = vmatprep.subr.bf16.mxu0 %v1371_v12 }
  0x4e   :  { %1263 = vmatprep.subr.bf16.mxu1 %v1371_v12 }
  0x50   :  { %1244 = vmatpush3.bf16.msra.mxu0 %v1357_v62 }
  0x51   :  { %1264 = vmatpush3.bf16.msra.mxu1 %v1358_v63  ;;  %1245 = vmatprep.subr.bf16.mxu0 %v1371_v12 }
  0x52   :  { %1265 = vmatprep.subr.bf16.mxu1 %v1371_v12 }
  0x54   :  { %1246 = vmatpush3.bf16.msra.mxu0 %v1359_v0 }
  0x55   :  { %1266 = vmatpush3.bf16.msra.mxu1 %v1360_v1  ;;  %1247 = vmatprep.subr.bf16.mxu0 %v1371_v12 }
  0x56   :  { %1267 = vmatprep.subr.bf16.mxu1 %v1371_v12 }
  0x58   :  { %1248 = vmatpush3.bf16.msra.mxu0 %v1361_v2 }
  0x59   :  { %1268 = vmatpush3.bf16.msra.mxu1 %v1362_v3  ;;  %1249 = vmatprep.subr.bf16.mxu0 %v1371_v12 }
  0x5a   :  { %1269 = vmatprep.subr.bf16.mxu1 %v1371_v12 }
  0x5c   :  { %1250 = vmatpush3.bf16.msra.mxu0 %v1363_v4 }
  0x5d   :  { %1270 = vmatpush3.bf16.msra.mxu1 %v1364_v5  ;;  %1251 = vmatprep.subr.bf16.mxu0 %v1371_v12 }
  0x5e   :  { %1271 = vmatprep.subr.bf16.mxu1 %v1371_v12  ;;  %v1111_v12 = vld [vmem:[%s1743_s3] ss:$0 sm:$0xff] }
  0x60   :  { %1252 = vmatpush3.bf16.msra.mxu0 %v1365_v6 }
  0x61   :  { %1272 = vmatpush3.bf16.msra.mxu1 %v1366_v7 }
  0xf6   :  { %v1147_v13 = vpop.f32.mrb[0].mxu0 }
  0xf7   :  { %v1169_v14 = vpop.f32.mrb[0].mxu1  ;;  %v1148_v16 = vpop.f32.mrb[1].mxu0 }
  0xf8   :  { %v1170_v17 = vpop.f32.mrb[1].mxu1  ;;  %v1149_v18 = vadd.f32 %v1148_v16, %v1147_v13  ;;  %v1150_v20 = vpop.f32.mrb[2].mxu0 }
  0xf9   :  { %v1171_v19 = vadd.f32 %v1170_v17, %v1169_v14  ;;  %v1172_v21 = vpop.f32.mrb[2].mxu1  ;;  %v1151_v22 = vpop.f32.mrb[3].mxu0 }
  0xfa   :  { %v1173_v23 = vpop.f32.mrb[3].mxu1  ;;  %v621_v24 = vadd.f32 %v1149_v18, %v1036_v15  ;;  %v1112_v21 = vld [vmem:[%s1744_s4] ss:$0 sm:$0xff] }
  0xfc   :  { %v661_v25 = vadd.f32 %v1171_v19, %v621_v24 }
 0x116   :  { %v1191_v28 = vpop.f32.mrb[4].mxu0 }
 0x117   :  { %v1213_v29 = vpop.f32.mrb[4].mxu1  ;;  %v1192_v30 = vpop.f32.mrb[5].mxu0 }
 0x118   :  { %v1214_v31 = vpop.f32.mrb[5].mxu1  ;;  %v1193_v32 = vadd.f32 %v1192_v30, %v1191_v28  ;;  %v1194_v34 = vpop.f32.mrb[6].mxu0 }
 0x119   :  { %v1215_v33 = vadd.f32 %v1214_v31, %v1213_v29  ;;  %v1216_v35 = vpop.f32.mrb[6].mxu1  ;;  %v1195_v36 = vpop.f32.mrb[7].mxu0 }
 0x11a   :  { %v1217_v37 = vpop.f32.mrb[7].mxu1  ;;  %v701_v38 = vadd.f32 %v1193_v32, %v661_v25 }
 0x11c   :  { %v741_v40 = vadd.f32 %v1215_v33, %v701_v38 }
 0x11e   :  { %v756_v41 = vmul.f32 %v1638_v39, %v741_v40  ;;  %v760_v43 = vmul.f32 %v1642_v42, %v741_v40 }
 0x120   :  { %757 = vadd.xlane.f32.xlu0 %v756_v41 }
 0x124   :  { %761 = vadd.xlane.f32.xlu0 %v760_v43 }
 0x1ad   :  { %v758_v44 = vpop.xlane.xlu0 %757 }
 0x1ae   :  { %v759_v45 = vmul.f32 0.03125, %v758_v44 }
 0x1b0   :  { %v764_v48 = vmul.f32 %v1638_v39, %v759_v45 }
 0x1b1   :  { %v762_v46 = vpop.xlane.xlu0 %761 }
 0x1b2   :  { %v763_v47 = vmul.f32 0.03125, %v762_v46 }
 0x1b4   :  { %v765_v49 = vmul.f32 %v1642_v42, %v763_v47 }
 0x1b6   :  { %v766_v50 = vadd.f32 %v765_v49, %v764_v48 }
 0x1b8   :  { %v1647_v51 = vsub.f32 %v741_v40, %v766_v50 }
 0x1ba   :  { %v768_v52 = vmul.f32 %v1638_v39, %v1647_v51  ;;  %v773_v54 = vmul.f32 %v1642_v42, %v1647_v51 }
 0x1bc   :  { %v769_v53 = vmul.f32 %v768_v52, %v768_v52  ;;  %v774_v55 = vmul.f32 %v773_v54, %v773_v54 }
 0x1be   :  { %770 = vadd.xlane.f32.xlu1 %v769_v53 }
 0x1c2   :  { %775 = vadd.xlane.f32.xlu1 %v774_v55 }
 0x24b   :  { %v771_v8 = vpop.xlane.xlu1 %770 }
 0x24c   :  { %v772_v9 = vmul.f32 0.03125, %v771_v8 }
 0x24e   :  { %v778_v10 = vadd.f32 1e-05, %v772_v9 }
 0x24f   :  { %v776_v11 = vpop.xlane.xlu1 %775 }
 0x250   :  { %v777_v13 = vmul.f32 0.03125, %v776_v11  ;;  %1367 = vrsqrt.f32 %v778_v10 }
 0x252   :  { %v781_v14 = vadd.f32 1e-05, %v777_v13 }
 0x254   :  { %1369 = vrsqrt.f32 %v781_v14 }
 0x25a   :  { %v1368_v15 = vpop.eup %1367 }
 0x25b   :  { %v780_v17 = vmul.f32 %v1368_v15, %v1638_v39 }
 0x25e   :  { %v1370_v16 = vpop.eup %1369 }
 0x25f   :  { %v783_v18 = vmul.f32 %v1370_v16, %v1642_v42 }
 0x261   :  { %v784_v19 = vadd.f32 %v783_v18, %v780_v17 }
 0x263   :  { %v785_v20 = vmul.f32 %v784_v19, %v1647_v51 }
 0x265   :  { %v793_v22 = vmul.f32 %v1111_v12, %v785_v20 }
 0x267   :  { %v801_v23 = vadd.f32 %v1112_v21, %v793_v22 }
 0x269   :  { %v802_v24 = vmax.f32 %v801_v23, 0.0 }
 0x26b   :  { %v803_v25 = vpack.c.bf16 %v802_v24, %v802_v24 }
 0x26d   :  { %1254 = vmatmul.mubr.bf16.vlgmr.msra.gmra.mrb[8].mxu0 %v803_v25  ;;  %1274 = vmatmul.mubr.bf16.vlgmr.msra.gmra.mrb[8].mxu1 %v803_v25 }
 0x340   :  { %v909_v28 = vpop.f32.mrb[8].mxu0  ;;  %v1021_v29 = vpop.f32.mrb[8].mxu1 }
 0x341   :  { %v910_v30 = vadd.f32 %v1113_v26, %v909_v28  ;;  %v1022_v31 = vadd.f32 %v1122_v27, %v1021_v29  ;;  %v1255_v32 = vpop.f32.mrb[9].mxu0  ;;  %v1275_v33 = vpop.f32.mrb[9].mxu1 }
 0x342   :  { %v912_v34 = vpop.f32.mrb[10].mxu0  ;;  %v1024_v35 = vpop.f32.mrb[10].mxu1 }
 0x343   :  { %915 = vst [vmem:[%s1747_s9] sm:$0xff] %v910_v30  ;;  %1027 = vst [vmem:[%s1748_s10] sm:$0xff] %v1022_v31  ;;  %v1256_v36 = vpop.f32.mrb[11].mxu0  ;;  %v1276_v37 = vpop.f32.mrb[11].mxu1 }

// kernel: prediction_network_forward.2
= control target key start
LH: loop header
LB: loop body
LE: loop exit
PB: predicated region body
PF: predicated region fallthrough
CT: control target
= control target key end

     0   :  { %12 = vsyncpa [#allocation4], 0  ;;  %s2577_s0 = inlined_call_operand.vmem [shape: f32[16,128], index: 0, kind: input, shape index: {}]   ;;  %s2578_s1 = inlined_call_operand.hbm [shape: bf16[6,128,128], index: 1, kind: input, shape index: {}]   ;;  %s2579_s2 = inlined_call_operand.vmem [shape: f32[2,1,128], index: 2, kind: input, shape index: {}]   ;;  %s2580_s3 = inlined_call_operand.hbm [shape: bf16[6,128,128], index: 3, kind: input, shape index: {}]   ;;  %s2581_s4 = inlined_call_operand.vmem [shape: f32[2,1,128], index: 4, kind: input, shape index: {}]   ;;  %s2582_s5 = inlined_call_operand.vmem [shape: bf16[128,128], index: 5, kind: input, shape index: {}]   ;;  %s2583_s6 = inlined_call_operand.vmem [shape: f32[1,128], index: 6, kind: input, shape index: {}]   ;;  %s2584_s7 = inlined_call_operand.vmem [shape: bf16[16,128], index: 7, kind: output, shape index: {}]  }
   0x1   :  { %13 = vsyncpa [#allocation6], 0  ;;  %s2277_s24 = smov [#allocation3]   ;;  %s2229_s28 = scalar_lea.hbm %s2578_s1, 6144 }
   0x2   :  { %s21_s25 = sshll.u32 %s2277_s24, 4  ;;  %p2230_p0 = scmp.ne.s32.totalorder %s2578_s1, %s2229_s28  ;;  %s22_s25 = int_to_ptr.vmem [resolvable:$true] %s21_s25 }
   0x3   :  { %p2233_p1 = scmp.lt.u32.totalorder %s2229_s28, %s2578_s1 }
   0x5   :  { %p2235_p2 = pnand %p2233_p1, %p2230_p0 }
   0x7   :  { %2238 = shalt.err (!%p2235_p2)
}
   0x8   :  { %s2239_s10 = scalar_lea.vmem %s22_s25, 6144  ;;  %p2244_p4 = scmp.lt.s32.totalorder %s22_s25, %s22_s25 }
   0x9   :  { %p2240_p3 = scmp.ne.s32.totalorder %s22_s25, %s2239_s10  ;;  %p2245_p5 = scmp.lt.s32.totalorder %s2239_s10, %s2239_s10 }
   0xb   :  { %p2246_p6 = por %p2245_p5, %p2244_p4 }
   0xd   :  { %p2247_p7 = pnand %p2246_p6, %p2240_p3 }
   0xf   :  { %2250 = shalt.err (!%p2247_p7)
}
  0x10   :  { %s2278_s11 = smov 64   ;;  %s2279_s12 = smov 4  }
  0x11   :  { %27 = dma.hbm_to_vmem [thread:$0]  %s2578_s1, 6144, %s22_s25, [#allocation4], %s2278_s11, %s2278_s11, %s2279_s12  }
  0x12   :  { %s2280_s15 = smov [#allocation5]   ;;  %s2251_s19 = scalar_lea.hbm %s2580_s3, 6144 }
  0x13   :  { %s35_s16 = sshll.u32 %s2280_s15, 4  ;;  %p2252_p8 = scmp.ne.s32.totalorder %s2580_s3, %s2251_s19  ;;  %s36_s16 = int_to_ptr.vmem [resolvable:$true] %s35_s16 }
  0x14   :  { %p2255_p9 = scmp.lt.u32.totalorder %s2251_s19, %s2580_s3 }
  0x16   :  { %p2257_p10 = pnand %p2255_p9, %p2252_p8 }
  0x18   :  { %2260 = shalt.err (!%p2257_p10)
}
  0x19   :  { %s2261_s24 = scalar_lea.vmem %s36_s16, 6144  ;;  %p2266_p12 = scmp.lt.s32.totalorder %s36_s16, %s36_s16 }
  0x1a   :  { %p2262_p11 = scmp.ne.s32.totalorder %s36_s16, %s2261_s24  ;;  %p2267_p13 = scmp.lt.s32.totalorder %s2261_s24, %s2261_s24 }
  0x1c   :  { %p2268_p0 = por %p2267_p13, %p2266_p12 }
  0x1e   :  { %p2269_p1 = pnand %p2268_p0, %p2262_p11 }
  0x20   :  { %2272 = shalt.err (!%p2269_p1)
}
  0x21   :  { %41 = dma.hbm_to_vmem [thread:$0]  %s2580_s3, 6144, %s36_s16, [#allocation6], %s2278_s11, %s2278_s11, %s2279_s12  }
  0x22   :  { %2273 = dma.done.wait [#allocation4], 6144  }
  0x23   :  { %2274 = vsyncadd [#allocation4], 4294961152 }
  0x24   :  { %2275 = dma.done.wait [#allocation6], 6144  }
  0x25   :  { %2276 = vsyncadd [#allocation6], 4294961152  ;;  %v2281_v0 = vmov 0.0   ;;  %vm2282_vm0 = vmmov 0   ;;  %v2124_v1 = vld [vmem:[#allocation3 + $0x40] sm:$0xff]   ;;  %v2126_v3 = vld [vmem:[#allocation3 + $0x48] sm:$0xff]   ;;  %v55_v5 = vlaneseq }
  0x26   :  { %1858 = vmatprep.subr.bf16.mxu0 %v2281_v0  ;;  %94 = vst [vmem:[#allocation2] sm:$0xff] %v2281_v0  ;;  %95 = vst [vmem:[#allocation2 + $0x18] sm:$0xff] %v2281_v0  ;;  %1878 = vmatprep.subr.bf16.mxu1 %v2281_v0  ;;  %v2125_v2 = vld [vmem:[#allocation3] sm:$0xff]   ;;  %v2127_v4 = vld [vmem:[#allocation3 + $0x8] sm:$0xff]  }
  0x27   :  { %1874 = vmatprep.mubr.msk.bf16.mxu0 %vm2282_vm0, %v2281_v0  ;;  %1894 = vmatprep.mubr.msk.bf16.mxu1 %vm2282_vm0, %v2281_v0  ;;  %v2128_v6 = vld [vmem:[#allocation3 + $0x50] sm:$0xff]   ;;  %v56_v8 = vshrl.u32 %v55_v5, 7  ;;  %v2130_v9 = vld [vmem:[#allocation3 + $0x58] sm:$0xff]   ;;  %v2132_v12 = vld [vmem:[#allocation3 + $0x60] sm:$0xff]  }
  0x28   :  { %1859 = vmatpush3.bf16.msra.mxu0 %v2124_v1  ;;  %1879 = vmatpush3.bf16.msra.mxu1 %v2125_v2  ;;  %v2129_v7 = vld [vmem:[#allocation3 + $0x10] sm:$0xff]   ;;  %v2131_v10 = vld [vmem:[#allocation3 + $0x18] sm:$0xff]   ;;  %v2133_v14 = vld [vmem:[#allocation3 + $0x20] sm:$0xff]  }
  0x29   :  { %1860 = vmatprep.subr.bf16.mxu0 %v2281_v0  ;;  %1880 = vmatprep.subr.bf16.mxu1 %v2281_v0  ;;  %v57_v11 = vadd.s32 8, %v56_v8  ;;  %v62_v13 = vand.u32 7, %v56_v8  ;;  %v2366_v15 = vld [vmem:[%s2577_s0] sm:$0xff]  ;;  %v2371_v16 = vld [vmem:[%s2577_s0 + $0x8] sm:$0xff]  ;;  %v2136_v21 = vld [vmem:[#allocation3 + $0x70] sm:$0xff]  }
  0x2a   :  { %98 = vst [vmem:[#allocation2 + $0x8] sm:$0xff] %v2366_v15  ;;  %99 = vst [vmem:[#allocation2 + $0x10] sm:$0xff] %v2371_v16  ;;  %v2134_v18 = vld [vmem:[#allocation3 + $0x68] sm:$0xff]   ;;  %v2137_v22 = vld [vmem:[#allocation3 + $0x30] sm:$0xff]   ;;  %v123_v33 = vpack.c.bf16 %v2371_v16, %v2366_v15 }
  0x2b   :  { %v69_v17 = vand.u32 7, %v57_v11  ;;  %vm82_vm1 = vcmp.ge.s32.totalorder %v62_v13, 1  ;;  %v2135_v19 = vld [vmem:[#allocation3 + $0x28] sm:$0xff]   ;;  %vm88_vm3 = vcmp.le.s32.totalorder %v62_v13, 6  ;;  %v2138_v26 = vld [vmem:[#allocation3 + $0x78] sm:$0xff]   ;;  %v2140_v32 = vld [vmem:[#allocation3 + $0x80] sm:$0xff]  }
  0x2c   :  { %1861 = vmatpush3.bf16.msra.mxu0 %v2126_v3  ;;  %1881 = vmatpush3.bf16.msra.mxu1 %v2127_v4  ;;  %v2378_v20 = vsel %vm82_vm1, 1.0, %v2281_v0  ;;  %v2139_v27 = vld [vmem:[#allocation3 + $0x38] sm:$0xff]   ;;  %v2386_v28 = vsel %vm88_vm3, 1.0, %v2281_v0  ;;  %v2141_v35 = vld [vmem:[#allocation3 + $0x88] sm:$0xff]   ;;  %v2142_v36 = vld [vmem:[#allocation3 + $0x90] sm:$0xff]  }
  0x2d   :  { %1862 = vmatprep.subr.bf16.mxu0 %v2281_v0  ;;  %1882 = vmatprep.subr.bf16.mxu1 %v2281_v0  ;;  %vm83_vm2 = vcmp.ge.s32.totalorder %v69_v17, 1  ;;  %vm89_vm4 = vcmp.le.s32.totalorder %v69_v17, 6  ;;  %v2143_v37 = vld [vmem:[#allocation3 + $0x98] sm:$0xff]   ;;  %v2144_v38 = vld [vmem:[#allocation3 + $0xa0] sm:$0xff]   ;;  %v2145_v39 = vld [vmem:[#allocation3 + $0xa8] sm:$0xff]  }
  0x2e   :  { %v2382_v23 = vsel %vm83_vm2, 1.0, %v2281_v0  ;;  %v2389_v29 = vsel %vm89_vm4, 1.0, %v2281_v0  ;;  %v2146_v40 = vld [vmem:[#allocation3 + $0xb0] sm:$0xff]   ;;  %v2147_v43 = vld [vmem:[#allocation3 + $0xb8] sm:$0xff]   ;;  %v2148_v47 = vld [vmem:[#allocation5 + $0x40] sm:$0xff]  }
  0x2f   :  { %v2149_v48 = vld [vmem:[#allocation5] sm:$0xff]   ;;  %v2150_v49 = vld [vmem:[#allocation5 + $0x48] sm:$0xff]   ;;  %v2152_v51 = vld [vmem:[#allocation5 + $0x50] sm:$0xff]  }
  0x30   :  { %1863 = vmatpush3.bf16.msra.mxu0 %v2128_v6  ;;  %1883 = vmatpush3.bf16.msra.mxu1 %v2129_v7  ;;  %v2151_v50 = vld [vmem:[#allocation5 + $0x8] sm:$0xff]   ;;  %v2153_v52 = vld [vmem:[#allocation5 + $0x10] sm:$0xff]   ;;  %v2154_v53 = vld [vmem:[#allocation5 + $0x58] sm:$0xff]  }
  0x31   :  { %1864 = vmatprep.subr.bf16.mxu0 %v2281_v0  ;;  %1884 = vmatprep.subr.bf16.mxu1 %v2281_v0  ;;  %v100_v24 = vld [vmem:[#allocation2 + $0x7] sm:$0xff]  ;;  %v101_v25 = vld [vmem:[#allocation2 + $0xf] sm:$0xff]  ;;  %v2155_v56 = vld [vmem:[#allocation5 + $0x18] sm:$0xff]  }
  0x32   :  { %v102_v30 = vmul.f32 %v2378_v20, %v100_v24  ;;  %v103_v31 = vmul.f32 %v2382_v23, %v101_v25  ;;  %v319_v41 = vld [vmem:[#allocation2 + $0x9] sm:$0xff]  ;;  %v320_v42 = vld [vmem:[#allocation2 + $0x11] sm:$0xff]  ;;  %v2156_v54 = vld [vmem:[#allocation5 + $0x60] sm:$0xff]  }
  0x33   :  { %v321_v44 = vmul.f32 %v2386_v28, %v319_v41  ;;  %v322_v45 = vmul.f32 %v2389_v29, %v320_v42  ;;  %v2158_v55 = vld [vmem:[#allocation5 + $0x68] sm:$0xff]   ;;  %v2160_v57 = vld [vmem:[#allocation5 + $0x70] sm:$0xff]   ;;  %v2157_v58 = vld [vmem:[#allocation5 + $0x20] sm:$0xff]  }
  0x34   :  { %1865 = vmatpush3.bf16.msra.mxu0 %v2130_v9  ;;  %1885 = vmatpush3.bf16.msra.mxu1 %v2131_v10  ;;  %v104_v34 = vpack.c.bf16 %v103_v31, %v102_v30  ;;  %v2162_v59 = vld [vmem:[#allocation5 + $0x78] sm:$0xff]   ;;  %v2159_v60 = vld [vmem:[#allocation5 + $0x28] sm:$0xff]   ;;  %v2161_v61 = vld [vmem:[#allocation5 + $0x30] sm:$0xff]  }
  0x35   :  { %1866 = vmatprep.subr.bf16.mxu0 %v2281_v0  ;;  %1886 = vmatprep.subr.bf16.mxu1 %v2281_v0  ;;  %v323_v46 = vpack.c.bf16 %v322_v45, %v321_v44  ;;  %v2163_v62 = vld [vmem:[#allocation5 + $0x38] sm:$0xff]   ;;  %v1645_v11 = vld [vmem:[%s2579_s2] ss:$0 sm:$0xff] }
  0x36   :  { %v2164_v25 = vld [vmem:[#allocation5 + $0x80] sm:$0xff]   ;;  %v2171_v42 = vld [vmem:[#allocation5 + $0xb8] sm:$0xff]  }
  0x38   :  { %1867 = vmatpush3.bf16.msra.mxu0 %v2132_v12  ;;  %1887 = vmatpush3.bf16.msra.mxu1 %v2133_v14 }
  0x39   :  { %1868 = vmatprep.subr.bf16.mxu0 %v2281_v0  ;;  %1888 = vmatprep.subr.bf16.mxu1 %v2281_v0 }
  0x3c   :  { %1869 = vmatpush3.bf16.msra.mxu0 %v2134_v18  ;;  %1889 = vmatpush3.bf16.msra.mxu1 %v2135_v19 }
  0x3d   :  { %1870 = vmatprep.subr.bf16.mxu0 %v2281_v0  ;;  %1890 = vmatprep.subr.bf16.mxu1 %v2281_v0 }
  0x40   :  { %1871 = vmatpush3.bf16.msra.mxu0 %v2136_v21  ;;  %1891 = vmatpush3.bf16.msra.mxu1 %v2137_v22 }
  0x41   :  { %1872 = vmatprep.subr.bf16.mxu0 %v2281_v0  ;;  %1892 = vmatprep.subr.bf16.mxu1 %v2281_v0 }
  0x44   :  { %1873 = vmatpush3.bf16.msra.mxu0 %v2138_v26  ;;  %1893 = vmatpush3.bf16.msra.mxu1 %v2139_v27  ;;  %v2165_v27 = vld [vmem:[#allocation5 + $0x88] sm:$0xff]  }
  0x45   :  { %1898 = vmatprep.subr.bf16.mxu0 %v2281_v0  ;;  %1918 = vmatprep.subr.bf16.mxu1 %v2281_v0 }
  0x47   :  { %1875 = vmatmul.mubr.bf16.vlgmr.msra.gmra.mrb[0].mxu0 %v123_v33  ;;  %1895 = vmatmul.mubr.bf16.vlgmr.msra.gmra.mrb[0].mxu1 %v104_v34 }
  0x48   :  { %1899 = vmatpush3.bf16.msra.mxu0 %v2140_v32  ;;  %1914 = vmatprep.mubr.msk.bf16.mxu0 %vm2282_vm0, %v2281_v0  ;;  %v2166_v32 = vld [vmem:[#allocation5 + $0x90] sm:$0xff]  }
  0x49   :  { %1900 = vmatprep.subr.bf16.mxu0 %v2281_v0  ;;  %1934 = vmatprep.mubr.msk.bf16.mxu1 %vm2282_vm0, %v2281_v0 }
  0x4a   :  { %1919 = vmatpush3.bf16.msra.mxu1 %v2148_v47  ;;  %v2173_v47 = vld [vmem:[#allocation3 + $0xc0] sm:$0xff]  }
  0x4b   :  { %1920 = vmatprep.subr.bf16.mxu1 %v2281_v0 }
  0x4c   :  { %1901 = vmatpush3.bf16.msra.mxu0 %v2141_v35 }
  0x4d   :  { %1902 = vmatprep.subr.bf16.mxu0 %v2281_v0 }
  0x4e   :  { %1921 = vmatpush3.bf16.msra.mxu1 %v2150_v49  ;;  %v2175_v49 = vld [vmem:[#allocation3 + $0xc8] sm:$0xff]  }
  0x4f   :  { %1922 = vmatprep.subr.bf16.mxu1 %v2281_v0 }
  0x50   :  { %1903 = vmatpush3.bf16.msra.mxu0 %v2142_v36  ;;  %v2167_v36 = vld [vmem:[#allocation5 + $0x98] sm:$0xff]  }
  0x51   :  { %1904 = vmatprep.subr.bf16.mxu0 %v2281_v0 }
  0x52   :  { %1923 = vmatpush3.bf16.msra.mxu1 %v2152_v51  ;;  %v2178_v51 = vld [vmem:[#allocation3 + $0x118] sm:$0xff]  }
  0x53   :  { %1924 = vmatprep.subr.bf16.mxu1 %v2281_v0 }
  0x54   :  { %1905 = vmatpush3.bf16.msra.mxu0 %v2143_v37  ;;  %v2168_v37 = vld [vmem:[#allocation5 + $0xa0] sm:$0xff]  }
  0x55   :  { %1906 = vmatprep.subr.bf16.mxu0 %v2281_v0 }
  0x56   :  { %1925 = vmatpush3.bf16.msra.mxu1 %v2154_v53  ;;  %v2177_v53 = vld [vmem:[#allocation3 + $0xd0] sm:$0xff]  }
  0x57   :  { %1926 = vmatprep.subr.bf16.mxu1 %v2281_v0 }
  0x58   :  { %1907 = vmatpush3.bf16.msra.mxu0 %v2144_v38  ;;  %v2169_v38 = vld [vmem:[#allocation5 + $0xa8] sm:$0xff]  }
  0x59   :  { %1908 = vmatprep.subr.bf16.mxu0 %v2281_v0 }
  0x5a   :  { %1927 = vmatpush3.bf16.msra.mxu1 %v2156_v54  ;;  %v2182_v54 = vld [vmem:[#allocation3 + $0x128] sm:$0xff]  }
  0x5b   :  { %1928 = vmatprep.subr.bf16.mxu1 %v2281_v0 }
  0x5c   :  { %1909 = vmatpush3.bf16.msra.mxu0 %v2145_v39  ;;  %v2170_v39 = vld [vmem:[#allocation5 + $0xb0] sm:$0xff]  }
  0x5d   :  { %1910 = vmatprep.subr.bf16.mxu0 %v2281_v0 }
  0x5e   :  { %1929 = vmatpush3.bf16.msra.mxu1 %v2158_v55  ;;  %v2179_v55 = vld [vmem:[#allocation3 + $0xd8] sm:$0xff]  }
  0x5f   :  { %1930 = vmatprep.subr.bf16.mxu1 %v2281_v0 }
  0x60   :  { %1911 = vmatpush3.bf16.msra.mxu0 %v2146_v40 }
  0x61   :  { %1912 = vmatprep.subr.bf16.mxu0 %v2281_v0 }
  0x62   :  { %1931 = vmatpush3.bf16.msra.mxu1 %v2160_v57  ;;  %v2181_v57 = vld [vmem:[#allocation3 + $0xe0] sm:$0xff]  }
  0x63   :  { %1932 = vmatprep.subr.bf16.mxu1 %v2281_v0 }
  0x64   :  { %1913 = vmatpush3.bf16.msra.mxu0 %v2147_v43 }
  0x65   :  { %1938 = vmatprep.subr.bf16.mxu0 %v2281_v0 }
  0x66   :  { %1933 = vmatpush3.bf16.msra.mxu1 %v2162_v59  ;;  %v2183_v59 = vld [vmem:[#allocation3 + $0xe8] sm:$0xff]  }
  0x67   :  { %1915 = vmatmul.mubr.bf16.vlgmr.msra.gmra.mrb[4].mxu0 %v323_v46  ;;  %1958 = vmatprep.subr.bf16.mxu1 %v2281_v0  ;;  %v2172_v46 = vld [vmem:[#allocation3 + $0x100] sm:$0xff]  }
  0x68   :  { %1954 = vmatprep.mubr.msk.bf16.mxu0 %vm2282_vm0, %v2281_v0  ;;  %1939 = vmatpush3.bf16.msra.mxu0 %v2149_v48  ;;  %v2174_v48 = vld [vmem:[#allocation3 + $0x108] sm:$0xff]  }
  0x69   :  { %1940 = vmatprep.subr.bf16.mxu0 %v2281_v0 }
  0x6c   :  { %1941 = vmatpush3.bf16.msra.mxu0 %v2151_v50  ;;  %v2176_v50 = vld [vmem:[#allocation3 + $0x110] sm:$0xff]  }
  0x6d   :  { %1942 = vmatprep.subr.bf16.mxu0 %v2281_v0 }
  0x70   :  { %1943 = vmatpush3.bf16.msra.mxu0 %v2153_v52  ;;  %v2180_v52 = vld [vmem:[#allocation3 + $0x120] sm:$0xff]  }
  0x71   :  { %1944 = vmatprep.subr.bf16.mxu0 %v2281_v0 }
  0x74   :  { %1945 = vmatpush3.bf16.msra.mxu0 %v2155_v56  ;;  %v2184_v56 = vld [vmem:[#allocation3 + $0x130] sm:$0xff]  }
  0x75   :  { %1946 = vmatprep.subr.bf16.mxu0 %v2281_v0 }
  0x78   :  { %1947 = vmatpush3.bf16.msra.mxu0 %v2157_v58  ;;  %v2186_v58 = vld [vmem:[#allocation3 + $0x138] sm:$0xff]  }
  0x79   :  { %1948 = vmatprep.subr.bf16.mxu0 %v2281_v0 }
  0x7c   :  { %1949 = vmatpush3.bf16.msra.mxu0 %v2159_v60  ;;  %v2185_v60 = vld [vmem:[#allocation3 + $0xf0] sm:$0xff]  }
  0x7d   :  { %1950 = vmatprep.subr.bf16.mxu0 %v2281_v0 }
  0x80   :  { %1951 = vmatpush3.bf16.msra.mxu0 %v2161_v61  ;;  %v2187_v61 = vld [vmem:[#allocation3 + $0xf8] sm:$0xff]  }
  0x81   :  { %1952 = vmatprep.subr.bf16.mxu0 %v2281_v0 }
  0x84   :  { %1953 = vmatpush3.bf16.msra.mxu0 %v2163_v62 }
  0x85   :  { %1978 = vmatprep.subr.bf16.mxu0 %v2281_v0 }
 0x11a   :  { %v223_v63 = vpop.f32.mrb[0].mxu0  ;;  %v312_v1 = vpop.f32.mrb[0].mxu1 }
 0x11b   :  { %v1876_v2 = vpop.f32.mrb[1].mxu0  ;;  %v313_v3 = vadd.f32 %v312_v1, %v223_v63  ;;  %v1896_v4 = vpop.f32.mrb[1].mxu1 }
 0x11c   :  { %v226_v5 = vpop.f32.mrb[2].mxu0  ;;  %v315_v6 = vpop.f32.mrb[2].mxu1 }
 0x11d   :  { %v1877_v7 = vpop.f32.mrb[3].mxu0  ;;  %v316_v8 = vadd.f32 %v315_v6, %v226_v5  ;;  %v1897_v9 = vpop.f32.mrb[3].mxu1 }
 0x13a   :  { %v423_v10 = vpop.f32.mrb[4].mxu0 }
 0x13b   :  { %v430_v12 = vadd.f32 %v423_v10, %v313_v3  ;;  %v1916_v13 = vpop.f32.mrb[5].mxu0  ;;  %v1670_v10 = vld [vmem:[%s2581_s4] ss:$0 sm:$0xff] }
 0x13c   :  { %v426_v14 = vpop.f32.mrb[6].mxu0 }
 0x13d   :  { %v439_v17 = vadd.f32 %v1645_v11, %v430_v12  ;;  %v431_v18 = vadd.f32 %v426_v14, %v316_v8  ;;  %v1917_v19 = vpop.f32.mrb[7].mxu0 }
 0x13f   :  { %v441_v21 = vmax.f32 %v439_v17, 0.0  ;;  %v440_v22 = vadd.f32 %v1645_v11, %v431_v18 }
 0x141   :  { %443 = vst [vmem:[#allocation2 + $0x8] sm:$0xff] %v441_v21  ;;  %v442_v24 = vmax.f32 %v440_v22, 0.0 }
 0x143   :  { %444 = vst [vmem:[#allocation2 + $0x10] sm:$0xff] %v442_v24  ;;  %v468_v26 = vpack.c.bf16 %v442_v24, %v441_v21 }
 0x145   :  { %1935 = vmatmul.mubr.bf16.vlgmr.msra.gmra.mrb[4].mxu1 %v468_v26  ;;  %v2188_v26 = vld [vmem:[#allocation3 + $0x140] sm:$0xff]  }
 0x146   :  { %1959 = vmatpush3.bf16.msra.mxu1 %v2164_v25  ;;  %1974 = vmatprep.mubr.msk.bf16.mxu1 %vm2282_vm0, %v2281_v0 }
 0x147   :  { %1960 = vmatprep.subr.bf16.mxu1 %v2281_v0 }
 0x148   :  { %v445_v30 = vld [vmem:[#allocation2 + $0x7] sm:$0xff] }
 0x149   :  { %v447_v33 = vmul.f32 %v2378_v20, %v445_v30  ;;  %v2189_v30 = vld [vmem:[#allocation3 + $0x148] sm:$0xff]  }
 0x14a   :  { %v446_v31 = vld [vmem:[#allocation2 + $0xf] sm:$0xff]  ;;  %1961 = vmatpush3.bf16.msra.mxu1 %v2165_v27 }
 0x14b   :  { %v448_v34 = vmul.f32 %v2382_v23, %v446_v31  ;;  %1962 = vmatprep.subr.bf16.mxu1 %v2281_v0  ;;  %v664_v40 = vld [vmem:[#allocation2 + $0x9] sm:$0xff]  ;;  %v665_v41 = vld [vmem:[#allocation2 + $0x11] sm:$0xff] }
 0x14c   :  { %v666_v43 = vmul.f32 %v2386_v28, %v664_v40  ;;  %v667_v44 = vmul.f32 %v2389_v29, %v665_v41  ;;  %v2190_v31 = vld [vmem:[#allocation3 + $0x150] sm:$0xff]   ;;  %v2195_v41 = vld [vmem:[#allocation3 + $0x178] sm:$0xff]  }
 0x14d   :  { %v449_v35 = vpack.c.bf16 %v448_v34, %v447_v33  ;;  %v2486_v34 = vld [vmem:[#allocation2] sm:$0xff] }
 0x14e   :  { %1963 = vmatpush3.bf16.msra.mxu1 %v2166_v32  ;;  %v668_v45 = vpack.c.bf16 %v667_v44, %v666_v43 }
 0x14f   :  { %1955 = vmatmul.mubr.bf16.vlgmr.msra.gmra.mrb[8].mxu0 %v449_v35  ;;  %1964 = vmatprep.subr.bf16.mxu1 %v2281_v0 }
 0x150   :  { %1994 = vmatprep.mubr.msk.bf16.mxu0 %vm2282_vm0, %v2281_v0  ;;  %1979 = vmatpush3.bf16.msra.mxu0 %v2172_v46  ;;  %v2197_v46 = vld [vmem:[#allocation5 + $0xc0] sm:$0xff]  }
 0x151   :  { %1980 = vmatprep.subr.bf16.mxu0 %v2281_v0 }
 0x152   :  { %1965 = vmatpush3.bf16.msra.mxu1 %v2167_v36  ;;  %v2191_v36 = vld [vmem:[#allocation3 + $0x158] sm:$0xff]  }
 0x153   :  { %1966 = vmatprep.subr.bf16.mxu1 %v2281_v0 }
 0x154   :  { %1981 = vmatpush3.bf16.msra.mxu0 %v2174_v48  ;;  %v2199_v48 = vld [vmem:[#allocation5 + $0xc8] sm:$0xff]  }
 0x155   :  { %1982 = vmatprep.subr.bf16.mxu0 %v2281_v0 }
 0x156   :  { %1967 = vmatpush3.bf16.msra.mxu1 %v2168_v37  ;;  %v2193_v37 = vld [vmem:[#allocation3 + $0x168] sm:$0xff]  }
 0x157   :  { %1968 = vmatprep.subr.bf16.mxu1 %v2281_v0 }
 0x158   :  { %1983 = vmatpush3.bf16.msra.mxu0 %v2176_v50  ;;  %v2201_v50 = vld [vmem:[#allocation5 + $0xd0] sm:$0xff]  }
 0x159   :  { %1984 = vmatprep.subr.bf16.mxu0 %v2281_v0 }
 0x15a   :  { %1969 = vmatpush3.bf16.msra.mxu1 %v2169_v38  ;;  %v2194_v38 = vld [vmem:[#allocation3 + $0x170] sm:$0xff]  }
 0x15b   :  { %1970 = vmatprep.subr.bf16.mxu1 %v2281_v0 }
 0x15c   :  { %1985 = vmatpush3.bf16.msra.mxu0 %v2178_v51  ;;  %v2202_v51 = vld [vmem:[#allocation5 + $0x118] sm:$0xff]  }
 0x15d   :  { %1986 = vmatprep.subr.bf16.mxu0 %v2281_v0 }
 0x15e   :  { %1971 = vmatpush3.bf16.msra.mxu1 %v2170_v39 }
 0x15f   :  { %1972 = vmatprep.subr.bf16.mxu1 %v2281_v0 }
 0x160   :  { %1987 = vmatpush3.bf16.msra.mxu0 %v2180_v52  ;;  %v2204_v52 = vld [vmem:[#allocation5 + $0x120] sm:$0xff]  }
 0x161   :  { %1988 = vmatprep.subr.bf16.mxu0 %v2281_v0 }
 0x162   :  { %1973 = vmatpush3.bf16.msra.mxu1 %v2171_v42 }
 0x163   :  { %1998 = vmatprep.subr.bf16.mxu1 %v2281_v0 }
 0x164   :  { %1989 = vmatpush3.bf16.msra.mxu0 %v2182_v54  ;;  %v2203_v54 = vld [vmem:[#allocation5 + $0xd8] sm:$0xff]  }
 0x165   :  { %1975 = vmatmul.mubr.bf16.vlgmr.msra.gmra.mrb[8].mxu1 %v668_v45  ;;  %1990 = vmatprep.subr.bf16.mxu0 %v2281_v0  ;;  %v2196_v45 = vld [vmem:[#allocation5 + $0x100] sm:$0xff]  }
 0x166   :  { %2014 = vmatprep.mubr.msk.bf16.mxu1 %vm2282_vm0, %v2281_v0  ;;  %1999 = vmatpush3.bf16.msra.mxu1 %v2173_v47  ;;  %v2198_v47 = vld [vmem:[#allocation5 + $0x108] sm:$0xff]  }
 0x167   :  { %2000 = vmatprep.subr.bf16.mxu1 %v2281_v0 }
 0x168   :  { %1991 = vmatpush3.bf16.msra.mxu0 %v2184_v56  ;;  %v2205_v56 = vld [vmem:[#allocation5 + $0xe0] sm:$0xff]  }
 0x169   :  { %1992 = vmatprep.subr.bf16.mxu0 %v2281_v0 }
 0x16a   :  { %2001 = vmatpush3.bf16.msra.mxu1 %v2175_v49  ;;  %v2200_v49 = vld [vmem:[#allocation5 + $0x110] sm:$0xff]  }
 0x16b   :  { %2002 = vmatprep.subr.bf16.mxu1 %v2281_v0 }
 0x16c   :  { %1993 = vmatpush3.bf16.msra.mxu0 %v2186_v58  ;;  %v2207_v58 = vld [vmem:[#allocation5 + $0xe8] sm:$0xff]  }
 0x16d   :  { %2018 = vmatprep.subr.bf16.mxu0 %v2281_v0 }
 0x16e   :  { %2003 = vmatpush3.bf16.msra.mxu1 %v2177_v53  ;;  %v2206_v53 = vld [vmem:[#allocation5 + $0x128] sm:$0xff]  }
 0x16f   :  { %2004 = vmatprep.subr.bf16.mxu1 %v2281_v0 }
 0x172   :  { %2005 = vmatpush3.bf16.msra.mxu1 %v2179_v55  ;;  %v2208_v55 = vld [vmem:[#allocation5 + $0x130] sm:$0xff]  }
 0x173   :  { %2006 = vmatprep.subr.bf16.mxu1 %v2281_v0 }
 0x176   :  { %2007 = vmatpush3.bf16.msra.mxu1 %v2181_v57  ;;  %v2210_v57 = vld [vmem:[#allocation5 + $0x138] sm:$0xff]  }
 0x177   :  { %2008 = vmatprep.subr.bf16.mxu1 %v2281_v0 }
 0x17a   :  { %2009 = vmatpush3.bf16.msra.mxu1 %v2183_v59  ;;  %v2209_v59 = vld [vmem:[#allocation5 + $0xf0] sm:$0xff]  }
 0x17b   :  { %2010 = vmatprep.subr.bf16.mxu1 %v2281_v0 }
 0x17e   :  { %2011 = vmatpush3.bf16.msra.mxu1 %v2185_v60  ;;  %v2211_v60 = vld [vmem:[#allocation5 + $0xf8] sm:$0xff]  }
 0x17f   :  { %2012 = vmatprep.subr.bf16.mxu1 %v2281_v0 }
 0x182   :  { %2013 = vmatpush3.bf16.msra.mxu1 %v2187_v61 }
 0x183   :  { %2038 = vmatprep.subr.bf16.mxu1 %v2281_v0 }
 0x218   :  { %v568_v62 = vpop.f32.mrb[4].mxu1 }
 0x219   :  { %v1936_v63 = vpop.f32.mrb[5].mxu1 }
 0x21a   :  { %v571_v1 = vpop.f32.mrb[6].mxu1 }
 0x21b   :  { %v1937_v2 = vpop.f32.mrb[7].mxu1 }
 0x222   :  { %v657_v3 = vpop.f32.mrb[8].mxu0 }
 0x223   :  { %v658_v4 = vadd.f32 %v657_v3, %v568_v62  ;;  %v1956_v5 = vpop.f32.mrb[9].mxu0 }
 0x224   :  { %v660_v6 = vpop.f32.mrb[10].mxu0 }
 0x225   :  { %v661_v7 = vadd.f32 %v660_v6, %v571_v1  ;;  %v1957_v8 = vpop.f32.mrb[11].mxu0 }
 0x238   :  { %v768_v9 = vpop.f32.mrb[8].mxu1 }
 0x239   :  { %v775_v11 = vadd.f32 %v768_v9, %v658_v4  ;;  %v1976_v12 = vpop.f32.mrb[9].mxu1  ;;  %v1696_v9 = vld [vmem:[%s2579_s2 + $0x1] ss:$0 sm:$0xff] }
 0x23a   :  { %v771_v13 = vpop.f32.mrb[10].mxu1 }
 0x23b   :  { %v784_v14 = vadd.f32 %v1670_v10, %v775_v11  ;;  %v776_v17 = vadd.f32 %v771_v13, %v661_v7  ;;  %v1977_v18 = vpop.f32.mrb[11].mxu1 }
 0x23d   :  { %v786_v19 = vadd.f32 %v784_v14, %v2366_v15  ;;  %v785_v21 = vadd.f32 %v1670_v10, %v776_v17 }
 0x23f   :  { %v2472_v22 = vmax.f32 %v786_v19, 0.0  ;;  %v787_v24 = vadd.f32 %v785_v21, %v2371_v16 }
 0x241   :  { %790 = vst [vmem:[#allocation2 + $0x8] sm:$0xff] %v2472_v22  ;;  %v2476_v25 = vmax.f32 %v787_v24, 0.0  ;;  %v2212_v24 = vld [vmem:[#allocation5 + $0x140] sm:$0xff]  }
 0x243   :  { %791 = vst [vmem:[#allocation2 + $0x10] sm:$0xff] %v2476_v25  ;;  %v816_v27 = vpack.c.bf16 %v2476_v25, %v2472_v22 }
 0x245   :  { %1995 = vmatmul.mubr.bf16.vlgmr.msra.gmra.mrb[12].mxu0 %v816_v27  ;;  %v2213_v27 = vld [vmem:[#allocation5 + $0x148] sm:$0xff]  }
 0x246   :  { %2019 = vmatpush3.bf16.msra.mxu0 %v2188_v26  ;;  %2034 = vmatprep.mubr.msk.bf16.mxu0 %vm2282_vm0, %v2281_v0 }
 0x247   :  { %2020 = vmatprep.subr.bf16.mxu0 %v2281_v0  ;;  %v2192_v0 = vld [vmem:[#allocation3 + $0x160] sm:$0xff]  }
 0x248   :  { %v792_v15 = vld [vmem:[#allocation2 + $0x7] sm:$0xff] }
 0x249   :  { %v794_v32 = vmul.f32 %v2378_v20, %v792_v15 }
 0x24a   :  { %v793_v16 = vld [vmem:[#allocation2 + $0xf] sm:$0xff]  ;;  %2021 = vmatpush3.bf16.msra.mxu0 %v2189_v30 }
 0x24b   :  { %v795_v33 = vmul.f32 %v2382_v23, %v793_v16  ;;  %2022 = vmatprep.subr.bf16.mxu0 %v2486_v34  ;;  %v1012_v39 = vld [vmem:[#allocation2 + $0x9] sm:$0xff]  ;;  %v1013_v40 = vld [vmem:[#allocation2 + $0x11] sm:$0xff] }
 0x24c   :  { %v1014_v42 = vmul.f32 %v2386_v28, %v1012_v39  ;;  %v1015_v43 = vmul.f32 %v2389_v29, %v1013_v40  ;;  %v2214_v16 = vld [vmem:[#allocation5 + $0x150] sm:$0xff]  }
 0x24d   :  { %v796_v35 = vpack.c.bf16 %v795_v33, %v794_v32 }
 0x24e   :  { %2023 = vmatpush3.bf16.msra.mxu0 %v2190_v31  ;;  %v1016_v44 = vpack.c.bf16 %v1015_v43, %v1014_v42  ;;  %v2220_v42 = vld [vmem:[%s2582_s5] sm:$0xff]   ;;  %v2221_v43 = vld [vmem:[%s2582_s5 + $0x8] sm:$0xff]  }
 0x24f   :  { %2015 = vmatmul.mubr.bf16.vlgmr.msra.gmra.mrb[12].mxu1 %v796_v35  ;;  %2024 = vmatprep.subr.bf16.mxu0 %v2486_v34  ;;  %v2215_v35 = vld [vmem:[#allocation5 + $0x158] sm:$0xff]  }
 0x250   :  { %2054 = vmatprep.mubr.msk.bf16.mxu1 %vm2282_vm0, %v2486_v34  ;;  %2039 = vmatpush3.bf16.msra.mxu1 %v2196_v45  ;;  %v2225_v45 = vld [vmem:[%s2582_s5 + $0x28] sm:$0xff]  }
 0x251   :  { %2040 = vmatprep.subr.bf16.mxu1 %v2486_v34 }
 0x252   :  { %2025 = vmatpush3.bf16.msra.mxu0 %v2191_v36  ;;  %v2216_v36 = vld [vmem:[#allocation5 + $0x160] sm:$0xff]  }
 0x253   :  { %2026 = vmatprep.subr.bf16.mxu0 %v2486_v34 }
 0x254   :  { %2041 = vmatpush3.bf16.msra.mxu1 %v2198_v47  ;;  %v2227_v47 = vld [vmem:[%s2582_s5 + $0x38] sm:$0xff]  }
 0x255   :  { %2042 = vmatprep.subr.bf16.mxu1 %v2486_v34 }
 0x256   :  { %2027 = vmatpush3.bf16.msra.mxu0 %v2192_v0  ;;  %v2217_v0 = vld [vmem:[#allocation5 + $0x168] sm:$0xff]  }
 0x257   :  { %2028 = vmatprep.subr.bf16.mxu0 %v2486_v34 }
 0x258   :  { %2043 = vmatpush3.bf16.msra.mxu1 %v2200_v49 }
 0x259   :  { %2044 = vmatprep.subr.bf16.mxu1 %v2486_v34 }
 0x25a   :  { %2029 = vmatpush3.bf16.msra.mxu0 %v2193_v37 }
 0x25b   :  { %2030 = vmatprep.subr.bf16.mxu0 %v2486_v34 }
 0x25c   :  { %2045 = vmatpush3.bf16.msra.mxu1 %v2202_v51 }
 0x25d   :  { %2046 = vmatprep.subr.bf16.mxu1 %v2486_v34 }
 0x25e   :  { %2031 = vmatpush3.bf16.msra.mxu0 %v2194_v38  ;;  %v2219_v38 = vld [vmem:[#allocation5 + $0x178] sm:$0xff]  }
 0x25f   :  { %2032 = vmatprep.subr.bf16.mxu0 %v2486_v34 }
 0x260   :  { %2047 = vmatpush3.bf16.msra.mxu1 %v2204_v52 }
 0x261   :  { %2048 = vmatprep.subr.bf16.mxu1 %v2486_v34 }
 0x262   :  { %2033 = vmatpush3.bf16.msra.mxu0 %v2195_v41 }
 0x263   :  { %2058 = vmatprep.subr.bf16.mxu0 %v2486_v34 }
 0x264   :  { %2049 = vmatpush3.bf16.msra.mxu1 %v2206_v53 }
 0x265   :  { %2035 = vmatmul.mubr.bf16.vlgmr.msra.gmra.mrb[16].mxu0 %v1016_v44  ;;  %2050 = vmatprep.subr.bf16.mxu1 %v2486_v34  ;;  %v2224_v44 = vld [vmem:[%s2582_s5 + $0x20] sm:$0xff]  }
 0x266   :  { %2074 = vmatprep.mubr.msk.bf16.mxu0 %vm2282_vm0, %v2486_v34  ;;  %2059 = vmatpush3.bf16.msra.mxu0 %v2197_v46  ;;  %v2226_v46 = vld [vmem:[%s2582_s5 + $0x30] sm:$0xff]  }
 0x267   :  { %2060 = vmatprep.subr.bf16.mxu0 %v2486_v34 }
 0x268   :  { %2051 = vmatpush3.bf16.msra.mxu1 %v2208_v55 }
 0x269   :  { %2052 = vmatprep.subr.bf16.mxu1 %v2486_v34 }
 0x26a   :  { %2061 = vmatpush3.bf16.msra.mxu0 %v2199_v48 }
 0x26b   :  { %2062 = vmatprep.subr.bf16.mxu0 %v2486_v34 }
 0x26c   :  { %2053 = vmatpush3.bf16.msra.mxu1 %v2210_v57 }
 0x26d   :  { %2078 = vmatprep.subr.bf16.mxu1 %v2486_v34 }
 0x26e   :  { %2063 = vmatpush3.bf16.msra.mxu0 %v2201_v50 }
 0x26f   :  { %2064 = vmatprep.subr.bf16.mxu0 %v2486_v34 }
 0x272   :  { %2065 = vmatpush3.bf16.msra.mxu0 %v2203_v54 }
 0x273   :  { %2066 = vmatprep.subr.bf16.mxu0 %v2486_v34 }
 0x276   :  { %2067 = vmatpush3.bf16.msra.mxu0 %v2205_v56 }
 0x277   :  { %2068 = vmatprep.subr.bf16.mxu0 %v2486_v34 }
 0x27a   :  { %2069 = vmatpush3.bf16.msra.mxu0 %v2207_v58 }
 0x27b   :  { %2070 = vmatprep.subr.bf16.mxu0 %v2486_v34 }
 0x27e   :  { %2071 = vmatpush3.bf16.msra.mxu0 %v2209_v59 }
 0x27f   :  { %2072 = vmatprep.subr.bf16.mxu0 %v2486_v34 }
 0x282   :  { %2073 = vmatpush3.bf16.msra.mxu0 %v2211_v60 }
 0x283   :  { %2098 = vmatprep.subr.bf16.mxu0 %v2486_v34 }
 0x318   :  { %v916_v61 = vpop.f32.mrb[12].mxu0 }
 0x319   :  { %v1996_v62 = vpop.f32.mrb[13].mxu0 }
 0x31a   :  { %v919_v63 = vpop.f32.mrb[14].mxu0 }
 0x31b   :  { %v1997_v1 = vpop.f32.mrb[15].mxu0 }
 0x322   :  { %v1005_v2 = vpop.f32.mrb[12].mxu1 }
 0x323   :  { %v1006_v3 = vadd.f32 %v1005_v2, %v916_v61  ;;  %v2016_v4 = vpop.f32.mrb[13].mxu1 }
 0x324   :  { %v1008_v5 = vpop.f32.mrb[14].mxu1 }
 0x325   :  { %v1009_v6 = vadd.f32 %v1008_v5, %v919_v63  ;;  %v2017_v7 = vpop.f32.mrb[15].mxu1 }
 0x338   :  { %v1116_v8 = vpop.f32.mrb[16].mxu0 }
 0x339   :  { %v1123_v10 = vadd.f32 %v1116_v8, %v1006_v3  ;;  %v2036_v11 = vpop.f32.mrb[17].mxu0  ;;  %v1723_v8 = vld [vmem:[%s2583_s6] ss:$0 sm:$0xff] }
 0x33a   :  { %v1119_v12 = vpop.f32.mrb[18].mxu0 }
 0x33b   :  { %v1133_v13 = vadd.f32 %v1696_v9, %v1123_v10  ;;  %v1124_v14 = vadd.f32 %v1119_v12, %v1009_v6  ;;  %v2037_v17 = vpop.f32.mrb[19].mxu0 }
 0x33d   :  { %v1135_v18 = vmax.f32 %v1133_v13, 0.0  ;;  %v1134_v19 = vadd.f32 %v1696_v9, %v1124_v14 }
 0x33f   :  { %1137 = vst [vmem:[#allocation2 + $0x8] sm:$0xff] %v1135_v18  ;;  %v1136_v21 = vmax.f32 %v1134_v19, 0.0 }
 0x341   :  { %1138 = vst [vmem:[#allocation2 + $0x10] sm:$0xff] %v1136_v21  ;;  %v1163_v26 = vpack.c.bf16 %v1136_v21, %v1135_v18 }
 0x343   :  { %2055 = vmatmul.mubr.bf16.vlgmr.msra.gmra.mrb[16].mxu1 %v1163_v26 }
 0x344   :  { %2079 = vmatpush3.bf16.msra.mxu1 %v2212_v24  ;;  %2094 = vmatprep.mubr.msk.bf16.mxu1 %vm2282_vm0, %v2486_v34 }
 0x345   :  { %2080 = vmatprep.subr.bf16.mxu1 %v2486_v34 }
 0x346   :  { %v1139_v30 = vld [vmem:[#allocation2 + $0x7] sm:$0xff] }
 0x347   :  { %v1141_v31 = vmul.f32 %v2378_v20, %v1139_v30  ;;  %v2218_v20 = vld [vmem:[#allocation5 + $0x170] sm:$0xff]  }
 0x348   :  { %v1140_v15 = vld [vmem:[#allocation2 + $0xf] sm:$0xff]  ;;  %2081 = vmatpush3.bf16.msra.mxu1 %v2213_v27 }
 0x349   :  { %v1142_v32 = vmul.f32 %v2382_v23, %v1140_v15  ;;  %2082 = vmatprep.subr.bf16.mxu1 %v2486_v34  ;;  %v1359_v23 = vld [vmem:[#allocation2 + $0x9] sm:$0xff]  ;;  %v1360_v37 = vld [vmem:[#allocation2 + $0x11] sm:$0xff] }
 0x34a   :  { %v1361_v39 = vmul.f32 %v2386_v28, %v1359_v23  ;;  %v1362_v40 = vmul.f32 %v2389_v29, %v1360_v37  ;;  %v2222_v28 = vld [vmem:[%s2582_s5 + $0x10] sm:$0xff]   ;;  %v2223_v29 = vld [vmem:[%s2582_s5 + $0x18] sm:$0xff]  }
 0x34b   :  { %v1143_v33 = vpack.c.bf16 %v1142_v32, %v1141_v31 }
 0x34c   :  { %2083 = vmatpush3.bf16.msra.mxu1 %v2214_v16  ;;  %v1363_v41 = vpack.c.bf16 %v1362_v40, %v1361_v39 }
 0x34d   :  { %2075 = vmatmul.mubr.bf16.vlgmr.msra.gmra.mrb[20].mxu0 %v1143_v33  ;;  %2084 = vmatprep.subr.bf16.mxu1 %v2486_v34 }
 0x34e   :  { %2114 = vmatprep.mubr.msk.bf16.mxu0 %vm2282_vm0, %v2486_v34  ;;  %2099 = vmatpush3.bf16.msra.mxu0 %v2220_v42 }
 0x34f   :  { %2100 = vmatprep.subr.bf16.mxu0 %v2486_v34 }
 0x350   :  { %2085 = vmatpush3.bf16.msra.mxu1 %v2215_v35 }
 0x351   :  { %2086 = vmatprep.subr.bf16.mxu1 %v2486_v34 }
 0x352   :  { %2101 = vmatpush3.bf16.msra.mxu0 %v2221_v43 }
 0x353   :  { %2102 = vmatprep.subr.bf16.mxu0 %v2486_v34 }
 0x354   :  { %2087 = vmatpush3.bf16.msra.mxu1 %v2216_v36 }
 0x355   :  { %2088 = vmatprep.subr.bf16.mxu1 %v2486_v34 }
 0x356   :  { %2103 = vmatpush3.bf16.msra.mxu0 %v2222_v28 }
 0x357   :  { %2104 = vmatprep.subr.bf16.mxu0 %v2486_v34 }
 0x358   :  { %2089 = vmatpush3.bf16.msra.mxu1 %v2217_v0 }
 0x359   :  { %2090 = vmatprep.subr.bf16.mxu1 %v2486_v34 }
 0x35a   :  { %2105 = vmatpush3.bf16.msra.mxu0 %v2223_v29 }
 0x35b   :  { %2106 = vmatprep.subr.bf16.mxu0 %v2486_v34 }
 0x35c   :  { %2091 = vmatpush3.bf16.msra.mxu1 %v2218_v20 }
 0x35d   :  { %2092 = vmatprep.subr.bf16.mxu1 %v2486_v34 }
 0x35e   :  { %2107 = vmatpush3.bf16.msra.mxu0 %v2224_v44 }
 0x35f   :  { %2108 = vmatprep.subr.bf16.mxu0 %v2486_v34 }
 0x360   :  { %2093 = vmatpush3.bf16.msra.mxu1 %v2219_v38 }
 0x362   :  { %2109 = vmatpush3.bf16.msra.mxu0 %v2225_v45 }
 0x363   :  { %2095 = vmatmul.mubr.bf16.vlgmr.msra.gmra.mrb[20].mxu1 %v1363_v41  ;;  %2110 = vmatprep.subr.bf16.mxu0 %v2486_v34 }
 0x366   :  { %2111 = vmatpush3.bf16.msra.mxu0 %v2226_v46 }
 0x367   :  { %2112 = vmatprep.subr.bf16.mxu0 %v2486_v34  ;;  %v1722_v34 = vld [vmem:[%s2581_s4 + $0x1] ss:$0 sm:$0xff] }
 0x36a   :  { %2113 = vmatpush3.bf16.msra.mxu0 %v2227_v47 }
 0x416   :  { %v1263_v48 = vpop.f32.mrb[16].mxu1 }
 0x417   :  { %v2056_v49 = vpop.f32.mrb[17].mxu1 }
 0x418   :  { %v1266_v50 = vpop.f32.mrb[18].mxu1 }
 0x419   :  { %v2057_v51 = vpop.f32.mrb[19].mxu1 }
 0x420   :  { %v1352_v52 = vpop.f32.mrb[20].mxu0 }
 0x421   :  { %v1353_v53 = vadd.f32 %v1352_v52, %v1263_v48  ;;  %v2076_v54 = vpop.f32.mrb[21].mxu0 }
 0x422   :  { %v1355_v55 = vpop.f32.mrb[22].mxu0 }
 0x423   :  { %v1356_v56 = vadd.f32 %v1355_v55, %v1266_v50  ;;  %v2077_v57 = vpop.f32.mrb[23].mxu0 }
 0x436   :  { %v1463_v58 = vpop.f32.mrb[20].mxu1 }
 0x437   :  { %v1470_v59 = vadd.f32 %v1463_v58, %v1353_v53  ;;  %v2096_v60 = vpop.f32.mrb[21].mxu1 }
 0x438   :  { %v1466_v61 = vpop.f32.mrb[22].mxu1 }
 0x439   :  { %v1480_v62 = vadd.f32 %v1722_v34, %v1470_v59  ;;  %v1471_v63 = vadd.f32 %v1466_v61, %v1356_v56  ;;  %v2097_v1 = vpop.f32.mrb[23].mxu1 }
 0x43b   :  { %v1482_v2 = vadd.f32 %v1480_v62, %v2472_v22  ;;  %v1481_v3 = vadd.f32 %v1722_v34, %v1471_v63 }
 0x43d   :  { %v1483_v4 = vadd.f32 %v1481_v3, %v2476_v25  ;;  %v1484_v5 = vmax.f32 %v1482_v2, 0.0 }
 0x43f   :  { %v1485_v6 = vmax.f32 %v1483_v4, 0.0 }
 0x441   :  { %v1486_v7 = vpack.c.bf16 %v1485_v6, %v1484_v5 }
 0x443   :  { %2115 = vmatmul.mubr.bf16.vlgmr.msra.gmra.mrb[24].mxu0 %v1486_v7 }
 0x516   :  { %v1592_v9 = vpop.f32.mrb[24].mxu0 }
 0x517   :  { %v1593_v10 = vadd.f32 %v1723_v8, %v1592_v9  ;;  %v2116_v11 = vpop.f32.mrb[25].mxu0 }
 0x518   :  { %v1595_v12 = vpop.f32.mrb[26].mxu0 }
 0x519   :  { %v1596_v13 = vadd.f32 %v1723_v8, %v1595_v12  ;;  %v2117_v14 = vpop.f32.mrb[27].mxu0  ;;  %v1599_v17 = vmax.f32 %v1593_v10, 0.0 }
 0x51b   :  { %v1600_v18 = vmax.f32 %v1596_v13, 0.0 }
 0x51d   :  { %v1739_v22 = vpack.c.bf16 %v1600_v18, %v1599_v17 }
 0x51f   :  { %1740 = vst [vmem:[%s2584_s7] sm:$0xff] %v1739_v22  }
 0x520   :  { %1615 = vsyncpa [#allocation4], 1 }
 0x521   :  { %1616 = vsyncpa [#allocation6], 1 }

</bundles_post_ra>
